<compile_context>
chip_gen: v6e
topology: v6e:2x2x1
jax: 0.10.0
libtpu: 0.0.40
codegen_flags: <defaults>
</compile_context>

<pallas_src>
from functools import partial

import jax
import jax.numpy as jnp
from jax.experimental import pallas as pl
from jax.experimental.pallas import tpu as pltpu

EPS = 1e-6


def vit_block_kernel(
    x_ref,                                  # (1, L, D)
    g1_ref, b1_ref, g2_ref, b2_ref,         # (1, 1, D) precomputed gamma/beta
    wq_ref, wk_ref, wv_ref,                 # (nh, D, dh) bf16 (wq pre-scaled)
    wo_ref,                                 # (nh, dh, D) bf16
    gatew_ref, hidw_ref, outw_ref,          # (D, H), (D, H), (H, D) bf16
    o_ref,                                  # (1, L, D)
    *, n_heads,
):
    f32 = jnp.float32
    bf16 = jnp.bfloat16

    x = x_ref[0].astype(f32)                # (L, D)
    L, D = x.shape
    nh = n_heads

    def rmsnorm(h, g, b):
        ms = jnp.mean(h * h, axis=-1, keepdims=True)
        return g * h * jax.lax.rsqrt(ms + EPS) + b

    # ---------------- attention branch ----------------
    xn = rmsnorm(x, g1_ref[0], b1_ref[0]).astype(bf16)        # (L, D) bf16
    xn_b = jnp.broadcast_to(xn, (nh, L, D))                   # (nh, L, D)

    # Per-head projections as one batched contraction (leading batch dim).
    q = jnp.einsum("hld,hde->hle", xn_b, wq_ref[...],
                   preferred_element_type=f32)                # (nh, L, dh); scale folded in wq
    k = jnp.einsum("hld,hde->hle", xn_b, wk_ref[...],
                   preferred_element_type=f32)
    v = jnp.einsum("hld,hde->hle", xn_b, wv_ref[...],
                   preferred_element_type=f32)

    s = jnp.einsum("hld,hmd->hlm", q.astype(bf16), k.astype(bf16),
                   preferred_element_type=f32)                # (nh, L, L)
    s = s - jnp.max(s, axis=-1, keepdims=True)
    p = jnp.exp(s)
    denom = jnp.sum(p, axis=-1, keepdims=True)
    p = p * pl.reciprocal(denom, approx=True)                 # EUP, not a VPU divide

    o = jnp.einsum("hlm,hmd->hld", p.astype(bf16), v.astype(bf16),
                   preferred_element_type=f32)                # (nh, L, dh)
    proj = jnp.einsum("hld,hde->hle", o.astype(bf16), wo_ref[...],
                      preferred_element_type=f32)             # (nh, L, D)
    attn = jnp.sum(proj, axis=0)                              # (L, D) — sum over heads
    x = x + attn

    # ---------------- SwiGLU FFN branch ----------------
    xn2 = rmsnorm(x, g2_ref[0], b2_ref[0]).astype(bf16)       # (L, D) bf16
    gate = jnp.dot(xn2, gatew_ref[...], preferred_element_type=f32)   # (L, H)
    hid = jnp.dot(xn2, hidw_ref[...], preferred_element_type=f32)     # (L, H)
    act = (gate * jax.nn.sigmoid(gate) * hid).astype(bf16)            # SiLU(gate) * hid
    ffn = jnp.dot(act, outw_ref[...], preferred_element_type=f32)     # (L, D)

    o_ref[0] = (x + ffn).astype(o_ref.dtype)


def time_conditional_vit_block(x, t, p, n_heads):
    B, L, D = x.shape
    nh = n_heads
    dh = D // nh
    H = p["gate_w"].shape[1]
    f32, bf16 = jnp.float32, jnp.bfloat16

    # Hoisted time-conditioning projections: one tiny batched GEMM each in XLA,
    # instead of four M=1 matmuls (plus 8 weight DMAs) per kernel invocation.
    g1 = (t @ p["g1_w"] + p["g1_b"]).reshape(B, 1, D).astype(f32)
    b1 = (t @ p["b1_w"] + p["b1_b"]).reshape(B, 1, D).astype(f32)
    g2 = (t @ p["g2_w"] + p["g2_b"]).reshape(B, 1, D).astype(f32)
    b2 = (t @ p["b2_w"] + p["b2_b"]).reshape(B, 1, D).astype(f32)

    # Pre-split attention weights per head; fold 1/sqrt(dh) into W_q (free).
    scale = float(dh) ** 0.5
    wq_h = (p["wq"] / scale).reshape(D, nh, dh).transpose(1, 0, 2).astype(bf16)
    wk_h = p["wk"].reshape(D, nh, dh).transpose(1, 0, 2).astype(bf16)
    wv_h = p["wv"].reshape(D, nh, dh).transpose(1, 0, 2).astype(bf16)
    wo_h = p["wo"].reshape(nh, dh, D).astype(bf16)
    gate_w = p["gate_w"].astype(bf16)
    hidden_w = p["hidden_w"].astype(bf16)
    out_w = p["out_w"].astype(bf16)

    def full(shape):
        return pl.BlockSpec(shape, lambda b: (0,) * len(shape))

    def per_batch(shape):
        return pl.BlockSpec(shape, lambda b: (b, 0, 0))

    # Advisory cost estimate so XLA can overlap neighbouring ops with the call.
    flops = B * (8 * L * D * D + 4 * L * L * D + 6 * L * D * H)
    transcendentals = B * (nh * L * L + L * H)
    bytes_accessed = 2 * B * L * D * 4 + 4 * B * D * 4 + (4 * D * D + 3 * D * H) * 2
    cost = pl.CostEstimate(flops=flops, transcendentals=transcendentals,
                           bytes_accessed=bytes_accessed)

    # NOTE: weight index_maps are constant across the grid, so they are only
    # DMA'd once; at production D/H, also consider pl.Buffered(1) on the weight
    # specs and re-tune vmem_limit_bytes (v7x has only 64 MiB physical VMEM).
    return pl.pallas_call(
        partial(vit_block_kernel, n_heads=n_heads),
        out_shape=jax.ShapeDtypeStruct((B, L, D), x.dtype),
        grid=(B,),
        in_specs=[
            per_batch((1, L, D)),                               # x
            per_batch((1, 1, D)), per_batch((1, 1, D)),         # gamma1, beta1
            per_batch((1, 1, D)), per_batch((1, 1, D)),         # gamma2, beta2
            full((nh, D, dh)), full((nh, D, dh)), full((nh, D, dh)),   # Wq, Wk, Wv
            full((nh, dh, D)),                                  # Wo
            full((D, H)), full((D, H)), full((H, D)),           # gate, hidden, out
        ],
        out_specs=per_batch((1, L, D)),
        compiler_params=pltpu.CompilerParams(
            dimension_semantics=("parallel",),
            vmem_limit_bytes=48 * 1024 * 1024,
        ),
        cost_estimate=cost,
    )(x, g1, b1, g2, b2, wq_h, wk_h, wv_h, wo_h, gate_w, hidden_w, out_w)


def ref_forward(x, t, p, n_heads, eps=EPS):
    """Pure-JAX (f32) reference mirroring the PyTorch module exactly."""
    B, L, D = x.shape
    dh = D // n_heads
    scale = float(dh) ** 0.5

    def norm(h, gw, gb, bw, bb):
        g = (t @ gw + gb)[:, None, :]
        b = (t @ bw + bb)[:, None, :]
        ms = jnp.mean(h * h, axis=-1, keepdims=True)
        return g * h * jax.lax.rsqrt(ms + eps) + b

    def attn(h):
        q = (h @ p["wq"]).reshape(B, L, n_heads, dh).transpose(0, 2, 1, 3)
        k = (h @ p["wk"]).reshape(B, L, n_heads, dh).transpose(0, 2, 1, 3)
        v = (h @ p["wv"]).reshape(B, L, n_heads, dh).transpose(0, 2, 1, 3)
        s = jnp.einsum("bhld,bhmd->bhlm", q, k) / scale
        pw = jax.nn.softmax(s, axis=-1)
        o = jnp.einsum("bhlm,bhmd->bhld", pw, v)
        o = o.transpose(0, 2, 1, 3).reshape(B, L, D)
        return o @ p["wo"]

    def ffn(h):
        g = h @ p["gate_w"]
        return (jax.nn.silu(g) * (h @ p["hidden_w"])) @ p["out_w"]

    x = x + attn(norm(x, p["g1_w"], p["g1_b"], p["b1_w"], p["b1_b"]))
    return x + ffn(norm(x, p["g2_w"], p["g2_b"], p["b2_w"], p["b2_b"]))


def make_params(key, d_model, d_t, hidden):
    ks = jax.random.split(key, 15)
    s = 0.05
    n = lambda k, shape: (s * jax.random.normal(k, shape)).astype(jnp.float32)
    return {
        "g1_w": n(ks[0], (d_t, d_model)), "g1_b": n(ks[1], (1, d_model)),
        "b1_w": n(ks[2], (d_t, d_model)), "b1_b": n(ks[3], (1, d_model)),
        "wq": n(ks[4], (d_model, d_model)), "wk": n(ks[5], (d_model, d_model)),
        "wv": n(ks[6], (d_model, d_model)), "wo": n(ks[7], (d_model, d_model)),
        "g2_w": n(ks[8], (d_t, d_model)), "g2_b": n(ks[9], (1, d_model)),
        "b2_w": n(ks[10], (d_t, d_model)), "b2_b": n(ks[11], (1, d_model)),
        "gate_w": n(ks[12], (d_model, hidden)),
        "hidden_w": n(ks[13], (d_model, hidden)),
        "out_w": n(ks[14], (hidden, d_model)),
    }


if __name__ == "__main__":
    # Small but lane-dense config: D multiple of 128 so stores are unmasked.
    B, L, D, d_t, n_heads = 2, 16, 128, 32, 4
    hidden = 4 * D

    key = jax.random.PRNGKey(0)
    kx, kt, kp = jax.random.split(key, 3)
    x = jax.random.normal(kx, (B, L, D), dtype=jnp.float32)
    t = jax.random.normal(kt, (B, d_t), dtype=jnp.float32)
    params = make_params(kp, D, d_t, hidden)

    out = jax.block_until_ready(time_conditional_vit_block(x, t, params, n_heads))
    ref = jax.block_until_ready(ref_forward(x, t, params, n_heads))

    err = float(jnp.max(jnp.abs(out - ref)))
    # bf16 matmul operands (f32 accumulation) + approx reciprocal -> relax vs f32 ref.
    assert err < 2e-2, f"max abs error too large: {err}"
    print("KERNEL_OK")
</pallas_src>

<mosaic_0001>
module attributes {stable_mosaic.version = 11 : i64} {
  func.func @vit_block_kernel(%arg0: i32, %arg1: memref<1x16x128xf32, #tpu.memory_space<vmem>>, %arg2: memref<1x1x128xf32, #tpu.memory_space<vmem>>, %arg3: memref<1x1x128xf32, #tpu.memory_space<vmem>>, %arg4: memref<1x1x128xf32, #tpu.memory_space<vmem>>, %arg5: memref<1x1x128xf32, #tpu.memory_space<vmem>>, %arg6: memref<4x128x32xbf16, #tpu.memory_space<vmem>>, %arg7: memref<4x128x32xbf16, #tpu.memory_space<vmem>>, %arg8: memref<4x128x32xbf16, #tpu.memory_space<vmem>>, %arg9: memref<4x32x128xbf16, #tpu.memory_space<vmem>>, %arg10: memref<128x512xbf16, #tpu.memory_space<vmem>>, %arg11: memref<128x512xbf16, #tpu.memory_space<vmem>>, %arg12: memref<512x128xbf16, #tpu.memory_space<vmem>>, %arg13: memref<1x16x128xf32, #tpu.memory_space<vmem>>) attributes {dimension_semantics = [#tpu.dimension_semantics<parallel>], iteration_bounds = array<i64: 2>, scalar_prefetch = 0 : i64, scratch_operands = 0 : i64, tpu.core_type = #tpu.core_type<tc>, window_params = [{transform_indices = @transform_0, window_bounds = array<i64: 1, 16, 128>}, {transform_indices = @transform_1, window_bounds = array<i64: 1, 1, 128>}, {transform_indices = @transform_2, window_bounds = array<i64: 1, 1, 128>}, {transform_indices = @transform_3, window_bounds = array<i64: 1, 1, 128>}, {transform_indices = @transform_4, window_bounds = array<i64: 1, 1, 128>}, {pipeline_mode = #tpu.pipeline_mode<synchronous>, transform_indices = @transform_5, window_bounds = array<i64: 4, 128, 32>}, {pipeline_mode = #tpu.pipeline_mode<synchronous>, transform_indices = @transform_6, window_bounds = array<i64: 4, 128, 32>}, {pipeline_mode = #tpu.pipeline_mode<synchronous>, transform_indices = @transform_7, window_bounds = array<i64: 4, 128, 32>}, {pipeline_mode = #tpu.pipeline_mode<synchronous>, transform_indices = @transform_8, window_bounds = array<i64: 4, 32, 128>}, {pipeline_mode = #tpu.pipeline_mode<synchronous>, transform_indices = @transform_9, window_bounds = array<i64: 128, 512>}, {pipeline_mode = #tpu.pipeline_mode<synchronous>, transform_indices = @transform_10, window_bounds = array<i64: 128, 512>}, {pipeline_mode = #tpu.pipeline_mode<synchronous>, transform_indices = @transform_11, window_bounds = array<i64: 512, 128>}, {transform_indices = @transform_12, window_bounds = array<i64: 1, 16, 128>}]} {
    %c0 = arith.constant 0 : index
    %c0_0 = arith.constant 0 : index
    %c0_1 = arith.constant 0 : index
    %0 = vector.load %arg1[%c0, %c0_0, %c0_1] : memref<1x16x128xf32, #tpu.memory_space<vmem>>, vector<1x16x128xf32>
    %1 = vector.shape_cast %0 : vector<1x16x128xf32> to vector<16x128xf32>
    %c0_2 = arith.constant 0 : index
    %c0_3 = arith.constant 0 : index
    %c0_4 = arith.constant 0 : index
    %2 = vector.load %arg2[%c0_2, %c0_3, %c0_4] : memref<1x1x128xf32, #tpu.memory_space<vmem>>, vector<1x1x128xf32>
    %3 = vector.shape_cast %2 : vector<1x1x128xf32> to vector<1x128xf32>
    %c0_5 = arith.constant 0 : index
    %c0_6 = arith.constant 0 : index
    %c0_7 = arith.constant 0 : index
    %4 = vector.load %arg3[%c0_5, %c0_6, %c0_7] : memref<1x1x128xf32, #tpu.memory_space<vmem>>, vector<1x1x128xf32>
    %5 = vector.shape_cast %4 : vector<1x1x128xf32> to vector<1x128xf32>
    %6 = arith.mulf %1, %1 : vector<16x128xf32>
    %cst = arith.constant dense<0.000000e+00> : vector<16xf32>
    %7 = vector.multi_reduction <add>, %6, %cst [1] : vector<16x128xf32> to vector<16xf32>
    %8 = vector.shape_cast %7 : vector<16xf32> to vector<16x1xf32>
    %cst_8 = arith.constant 1.280000e+02 : f32
    %9 = vector.broadcast %cst_8 : f32 to vector<16x1xf32>
    %10 = arith.divf %8, %9 : vector<16x1xf32>
    %11 = vector.broadcast %3 : vector<1x128xf32> to vector<16x128xf32>
    %12 = arith.mulf %11, %1 : vector<16x128xf32>
    %cst_9 = arith.constant 9.99999997E-7 : f32
    %13 = vector.broadcast %cst_9 : f32 to vector<16x1xf32>
    %14 = arith.addf %10, %13 : vector<16x1xf32>
    %15 = math.rsqrt %14 : vector<16x1xf32>
    %16 = vector.broadcast %15 : vector<16x1xf32> to vector<16x128xf32>
    %17 = arith.mulf %12, %16 : vector<16x128xf32>
    %18 = vector.broadcast %5 : vector<1x128xf32> to vector<16x128xf32>
    %19 = arith.addf %17, %18 : vector<16x128xf32>
    %20 = arith.truncf %19 : vector<16x128xf32> to vector<16x128xbf16>
    %21 = vector.shape_cast %20 : vector<16x128xbf16> to vector<1x16x128xbf16>
    %22 = vector.broadcast %21 : vector<1x16x128xbf16> to vector<4x16x128xbf16>
    %c0_10 = arith.constant 0 : index
    %c0_11 = arith.constant 0 : index
    %c0_12 = arith.constant 0 : index
    %23 = vector.load %arg6[%c0_10, %c0_11, %c0_12] : memref<4x128x32xbf16, #tpu.memory_space<vmem>>, vector<4x128x32xbf16>
    "tpu.trace_start"() <{level = 10 : i32, message = "hld,hde->hle"}> : () -> ()
    %cst_13 = arith.constant dense<0.000000e+00> : vector<4x16x32xf32>
    %24 = tpu.matmul %22, %23, %cst_13 {dimension_numbers = #tpu.dot_dimension_numbers<[2], [1], [1], [2], [0, 0, 0, 1, 1, 2], [0], [0]>} : vector<4x16x128xbf16>, vector<4x128x32xbf16>, vector<4x16x32xf32> -> vector<4x16x32xf32>
    "tpu.trace_stop"() : () -> ()
    %c0_14 = arith.constant 0 : index
    %c0_15 = arith.constant 0 : index
    %c0_16 = arith.constant 0 : index
    %25 = vector.load %arg7[%c0_14, %c0_15, %c0_16] : memref<4x128x32xbf16, #tpu.memory_space<vmem>>, vector<4x128x32xbf16>
    "tpu.trace_start"() <{level = 10 : i32, message = "hld,hde->hle"}> : () -> ()
    %cst_17 = arith.constant dense<0.000000e+00> : vector<4x16x32xf32>
    %26 = tpu.matmul %22, %25, %cst_17 {dimension_numbers = #tpu.dot_dimension_numbers<[2], [1], [1], [2], [0, 0, 0, 1, 1, 2], [0], [0]>} : vector<4x16x128xbf16>, vector<4x128x32xbf16>, vector<4x16x32xf32> -> vector<4x16x32xf32>
    "tpu.trace_stop"() : () -> ()
    %c0_18 = arith.constant 0 : index
    %c0_19 = arith.constant 0 : index
    %c0_20 = arith.constant 0 : index
    %27 = vector.load %arg8[%c0_18, %c0_19, %c0_20] : memref<4x128x32xbf16, #tpu.memory_space<vmem>>, vector<4x128x32xbf16>
    "tpu.trace_start"() <{level = 10 : i32, message = "hld,hde->hle"}> : () -> ()
    %cst_21 = arith.constant dense<0.000000e+00> : vector<4x16x32xf32>
    %28 = tpu.matmul %22, %27, %cst_21 {dimension_numbers = #tpu.dot_dimension_numbers<[2], [1], [1], [2], [0, 0, 0, 1, 1, 2], [0], [0]>} : vector<4x16x128xbf16>, vector<4x128x32xbf16>, vector<4x16x32xf32> -> vector<4x16x32xf32>
    "tpu.trace_stop"() : () -> ()
    %29 = arith.truncf %24 : vector<4x16x32xf32> to vector<4x16x32xbf16>
    %30 = arith.truncf %26 : vector<4x16x32xf32> to vector<4x16x32xbf16>
    "tpu.trace_start"() <{level = 10 : i32, message = "hld,hmd->hlm"}> : () -> ()
    %cst_22 = arith.constant dense<0.000000e+00> : vector<4x16x16xf32>
    %31 = tpu.matmul %29, %30, %cst_22 {dimension_numbers = #tpu.dot_dimension_numbers<[2], [2], [1], [1], [0, 0, 0, 1, 1, 1], [0], [0]>} : vector<4x16x32xbf16>, vector<4x16x32xbf16>, vector<4x16x16xf32> -> vector<4x16x16xf32>
    "tpu.trace_stop"() : () -> ()
    %cst_23 = arith.constant dense<0xFF800000> : vector<4x16xf32>
    %32 = vector.multi_reduction <maximumf>, %31, %cst_23 [2] : vector<4x16x16xf32> to vector<4x16xf32>
    %33 = vector.shape_cast %32 : vector<4x16xf32> to vector<4x16x1xf32>
    %34 = vector.broadcast %33 : vector<4x16x1xf32> to vector<4x16x16xf32>
    %35 = arith.subf %31, %34 : vector<4x16x16xf32>
    %36 = math.exp %35 : vector<4x16x16xf32>
    %cst_24 = arith.constant dense<0.000000e+00> : vector<4x16xf32>
    %37 = vector.multi_reduction <add>, %36, %cst_24 [2] : vector<4x16x16xf32> to vector<4x16xf32>
    %38 = vector.shape_cast %37 : vector<4x16xf32> to vector<4x16x1xf32>
    %39 = tpu.reciprocal %38 {approx = true} : vector<4x16x1xf32> -> vector<4x16x1xf32>
    %40 = vector.broadcast %39 : vector<4x16x1xf32> to vector<4x16x16xf32>
    %41 = arith.mulf %36, %40 : vector<4x16x16xf32>
    %42 = arith.truncf %41 : vector<4x16x16xf32> to vector<4x16x16xbf16>
    %43 = arith.truncf %28 : vector<4x16x32xf32> to vector<4x16x32xbf16>
    "tpu.trace_start"() <{level = 10 : i32, message = "hlm,hmd->hld"}> : () -> ()
    %cst_25 = arith.constant dense<0.000000e+00> : vector<4x16x32xf32>
    %44 = tpu.matmul %42, %43, %cst_25 {dimension_numbers = #tpu.dot_dimension_numbers<[2], [1], [1], [2], [0, 0, 0, 1, 1, 2], [0], [0]>} : vector<4x16x16xbf16>, vector<4x16x32xbf16>, vector<4x16x32xf32> -> vector<4x16x32xf32>
    "tpu.trace_stop"() : () -> ()
    %45 = arith.truncf %44 : vector<4x16x32xf32> to vector<4x16x32xbf16>
    %c0_26 = arith.constant 0 : index
    %c0_27 = arith.constant 0 : index
    %c0_28 = arith.constant 0 : index
    %46 = vector.load %arg9[%c0_26, %c0_27, %c0_28] : memref<4x32x128xbf16, #tpu.memory_space<vmem>>, vector<4x32x128xbf16>
    "tpu.trace_start"() <{level = 10 : i32, message = "hld,hde->hle"}> : () -> ()
    %cst_29 = arith.constant dense<0.000000e+00> : vector<4x16x128xf32>
    %47 = tpu.matmul %45, %46, %cst_29 {dimension_numbers = #tpu.dot_dimension_numbers<[2], [1], [1], [2], [0, 0, 0, 1, 1, 2], [0], [0]>} : vector<4x16x32xbf16>, vector<4x32x128xbf16>, vector<4x16x128xf32> -> vector<4x16x128xf32>
    "tpu.trace_stop"() : () -> ()
    %cst_30 = arith.constant dense<0.000000e+00> : vector<16x128xf32>
    %48 = vector.multi_reduction <add>, %47, %cst_30 [0] : vector<4x16x128xf32> to vector<16x128xf32>
    %49 = arith.addf %1, %48 : vector<16x128xf32>
    %c0_31 = arith.constant 0 : index
    %c0_32 = arith.constant 0 : index
    %c0_33 = arith.constant 0 : index
    %50 = vector.load %arg4[%c0_31, %c0_32, %c0_33] : memref<1x1x128xf32, #tpu.memory_space<vmem>>, vector<1x1x128xf32>
    %51 = vector.shape_cast %50 : vector<1x1x128xf32> to vector<1x128xf32>
    %c0_34 = arith.constant 0 : index
    %c0_35 = arith.constant 0 : index
    %c0_36 = arith.constant 0 : index
    %52 = vector.load %arg5[%c0_34, %c0_35, %c0_36] : memref<1x1x128xf32, #tpu.memory_space<vmem>>, vector<1x1x128xf32>
    %53 = vector.shape_cast %52 : vector<1x1x128xf32> to vector<1x128xf32>
    %54 = arith.mulf %49, %49 : vector<16x128xf32>
    %cst_37 = arith.constant dense<0.000000e+00> : vector<16xf32>
    %55 = vector.multi_reduction <add>, %54, %cst_37 [1] : vector<16x128xf32> to vector<16xf32>
    %56 = vector.shape_cast %55 : vector<16xf32> to vector<16x1xf32>
    %cst_38 = arith.constant 1.280000e+02 : f32
    %57 = vector.broadcast %cst_38 : f32 to vector<16x1xf32>
    %58 = arith.divf %56, %57 : vector<16x1xf32>
    %59 = vector.broadcast %51 : vector<1x128xf32> to vector<16x128xf32>
    %60 = arith.mulf %59, %49 : vector<16x128xf32>
    %cst_39 = arith.constant 9.99999997E-7 : f32
    %61 = vector.broadcast %cst_39 : f32 to vector<16x1xf32>
    %62 = arith.addf %58, %61 : vector<16x1xf32>
    %63 = math.rsqrt %62 : vector<16x1xf32>
    %64 = vector.broadcast %63 : vector<16x1xf32> to vector<16x128xf32>
    %65 = arith.mulf %60, %64 : vector<16x128xf32>
    %66 = vector.broadcast %53 : vector<1x128xf32> to vector<16x128xf32>
    %67 = arith.addf %65, %66 : vector<16x128xf32>
    %68 = arith.truncf %67 : vector<16x128xf32> to vector<16x128xbf16>
    %c0_40 = arith.constant 0 : index
    %c0_41 = arith.constant 0 : index
    %69 = vector.load %arg10[%c0_40, %c0_41] : memref<128x512xbf16, #tpu.memory_space<vmem>>, vector<128x512xbf16>
    %cst_42 = arith.constant dense<0.000000e+00> : vector<16x512xf32>
    %70 = tpu.matmul %68, %69, %cst_42 {dimension_numbers = #tpu.dot_dimension_numbers<[1], [0], [0], [1], [0, 0, 1, 1], [], []>} : vector<16x128xbf16>, vector<128x512xbf16>, vector<16x512xf32> -> vector<16x512xf32>
    %c0_43 = arith.constant 0 : index
    %c0_44 = arith.constant 0 : index
    %71 = vector.load %arg11[%c0_43, %c0_44] : memref<128x512xbf16, #tpu.memory_space<vmem>>, vector<128x512xbf16>
    %cst_45 = arith.constant dense<0.000000e+00> : vector<16x512xf32>
    %72 = tpu.matmul %68, %71, %cst_45 {dimension_numbers = #tpu.dot_dimension_numbers<[1], [0], [0], [1], [0, 0, 1, 1], [], []>} : vector<16x128xbf16>, vector<128x512xbf16>, vector<16x512xf32> -> vector<16x512xf32>
    %73 = arith.negf %70 : vector<16x512xf32>
    %74 = math.exp %73 : vector<16x512xf32>
    %cst_46 = arith.constant 1.000000e+00 : f32
    %75 = vector.broadcast %cst_46 : f32 to vector<16x512xf32>
    %76 = arith.addf %75, %74 : vector<16x512xf32>
    %77 = arith.divf %75, %76 : vector<16x512xf32>
    %78 = arith.mulf %70, %77 : vector<16x512xf32>
    %79 = arith.mulf %78, %72 : vector<16x512xf32>
    %80 = arith.truncf %79 : vector<16x512xf32> to vector<16x512xbf16>
    %c0_47 = arith.constant 0 : index
    %c0_48 = arith.constant 0 : index
    %81 = vector.load %arg12[%c0_47, %c0_48] : memref<512x128xbf16, #tpu.memory_space<vmem>>, vector<512x128xbf16>
    %cst_49 = arith.constant dense<0.000000e+00> : vector<16x128xf32>
    %82 = tpu.matmul %80, %81, %cst_49 {dimension_numbers = #tpu.dot_dimension_numbers<[1], [0], [0], [1], [0, 0, 1, 1], [], []>} : vector<16x512xbf16>, vector<512x128xbf16>, vector<16x128xf32> -> vector<16x128xf32>
    %83 = arith.addf %49, %82 : vector<16x128xf32>
    %c0_50 = arith.constant 0 : index
    %c0_51 = arith.constant 0 : index
    %c0_52 = arith.constant 0 : index
    %84 = vector.load %arg13[%c0_50, %c0_51, %c0_52] : memref<1x16x128xf32, #tpu.memory_space<vmem>>, vector<1x16x128xf32>
    %85 = vector.shape_cast %84 : vector<1x16x128xf32> to vector<16x128xf32>
    %86 = vector.shape_cast %83 : vector<16x128xf32> to vector<1x16x128xf32>
    tpu.vector_store %arg13[%c0_50, %c0_51, %c0_52], %86 {strides = array<i32>} : memref<1x16x128xf32, #tpu.memory_space<vmem>>, vector<1x16x128xf32>,
    return
  }
  func.func @transform_0(%arg0: i32) -> (i32, i32, i32) {
    %c0_i32 = arith.constant 0 : i32
    %c0_i32_0 = arith.constant 0 : i32
    %c0_i32_1 = arith.constant 0 : i32
    return %arg0, %c0_i32, %c0_i32_0 : i32, i32, i32
  }
  func.func @transform_1(%arg0: i32) -> (i32, i32, i32) {
    %c0_i32 = arith.constant 0 : i32
    %c0_i32_0 = arith.constant 0 : i32
    %c0_i32_1 = arith.constant 0 : i32
    return %arg0, %c0_i32, %c0_i32_0 : i32, i32, i32
  }
  func.func @transform_2(%arg0: i32) -> (i32, i32, i32) {
    %c0_i32 = arith.constant 0 : i32
    %c0_i32_0 = arith.constant 0 : i32
    %c0_i32_1 = arith.constant 0 : i32
    return %arg0, %c0_i32, %c0_i32_0 : i32, i32, i32
  }
  func.func @transform_3(%arg0: i32) -> (i32, i32, i32) {
    %c0_i32 = arith.constant 0 : i32
    %c0_i32_0 = arith.constant 0 : i32
    %c0_i32_1 = arith.constant 0 : i32
    return %arg0, %c0_i32, %c0_i32_0 : i32, i32, i32
  }
  func.func @transform_4(%arg0: i32) -> (i32, i32, i32) {
    %c0_i32 = arith.constant 0 : i32
    %c0_i32_0 = arith.constant 0 : i32
    %c0_i32_1 = arith.constant 0 : i32
    return %arg0, %c0_i32, %c0_i32_0 : i32, i32, i32
  }
  func.func @transform_5(%arg0: i32) -> (i32, i32, i32) {
    %c0_i32 = arith.constant 0 : i32
    %c0_i32_0 = arith.constant 0 : i32
    %c0_i32_1 = arith.constant 0 : i32
    %c0_i32_2 = arith.constant 0 : i32
    return %c0_i32, %c0_i32_0, %c0_i32_1 : i32, i32, i32
  }
  func.func @transform_6(%arg0: i32) -> (i32, i32, i32) {
    %c0_i32 = arith.constant 0 : i32
    %c0_i32_0 = arith.constant 0 : i32
    %c0_i32_1 = arith.constant 0 : i32
    %c0_i32_2 = arith.constant 0 : i32
    return %c0_i32, %c0_i32_0, %c0_i32_1 : i32, i32, i32
  }
  func.func @transform_7(%arg0: i32) -> (i32, i32, i32) {
    %c0_i32 = arith.constant 0 : i32
    %c0_i32_0 = arith.constant 0 : i32
    %c0_i32_1 = arith.constant 0 : i32
    %c0_i32_2 = arith.constant 0 : i32
    return %c0_i32, %c0_i32_0, %c0_i32_1 : i32, i32, i32
  }
  func.func @transform_8(%arg0: i32) -> (i32, i32, i32) {
    %c0_i32 = arith.constant 0 : i32
    %c0_i32_0 = arith.constant 0 : i32
    %c0_i32_1 = arith.constant 0 : i32
    %c0_i32_2 = arith.constant 0 : i32
    return %c0_i32, %c0_i32_0, %c0_i32_1 : i32, i32, i32
  }
  func.func @transform_9(%arg0: i32) -> (i32, i32) {
    %c0_i32 = arith.constant 0 : i32
    %c0_i32_0 = arith.constant 0 : i32
    %c0_i32_1 = arith.constant 0 : i32
    return %c0_i32, %c0_i32_0 : i32, i32
  }
  func.func @transform_10(%arg0: i32) -> (i32, i32) {
    %c0_i32 = arith.constant 0 : i32
    %c0_i32_0 = arith.constant 0 : i32
    %c0_i32_1 = arith.constant 0 : i32
    return %c0_i32, %c0_i32_0 : i32, i32
  }
  func.func @transform_11(%arg0: i32) -> (i32, i32) {
    %c0_i32 = arith.constant 0 : i32
    %c0_i32_0 = arith.constant 0 : i32
    %c0_i32_1 = arith.constant 0 : i32
    return %c0_i32, %c0_i32_0 : i32, i32
  }
  func.func @transform_12(%arg0: i32) -> (i32, i32, i32) {
    %c0_i32 = arith.constant 0 : i32
    %c0_i32_0 = arith.constant 0 : i32
    %c0_i32_1 = arith.constant 0 : i32
    return %arg0, %c0_i32, %c0_i32_0 : i32, i32, i32
  }
}

</mosaic_0001>

<bundles_post_ra>
// kernel: tpu_custom_call.1
= control target key start
LH: loop header
LB: loop body
LE: loop exit
PB: predicated region body
PF: predicated region fallthrough
CT: control target
= control target key end

     0   :  { %s6300_s0 = inlined_call_operand.hbm [shape: f32[2,16,128], index: 0, kind: input, shape index: {}]   ;;  %s6301_s1 = inlined_call_operand.hbm [shape: f32[2,1,128], index: 1, kind: input, shape index: {}]   ;;  %s6302_s2 = inlined_call_operand.hbm [shape: f32[2,1,128], index: 2, kind: input, shape index: {}]   ;;  %s6303_s3 = inlined_call_operand.hbm [shape: f32[2,1,128], index: 3, kind: input, shape index: {}]   ;;  %s6304_s4 = inlined_call_operand.hbm [shape: f32[2,1,128], index: 4, kind: input, shape index: {}]   ;;  %s6305_s5 = inlined_call_operand.vmem [shape: bf16[4,128,32], index: 5, kind: input, shape index: {}]   ;;  %s6306_s6 = inlined_call_operand.vmem [shape: bf16[4,128,32], index: 6, kind: input, shape index: {}]   ;;  %s6307_s7 = inlined_call_operand.vmem [shape: bf16[4,128,32], index: 7, kind: input, shape index: {}]   ;;  %s6308_s8 = inlined_call_operand.vmem [shape: bf16[4,32,128], index: 8, kind: input, shape index: {}]   ;;  %s6309_s9 = inlined_call_operand.vmem [shape: bf16[128,512], index: 9, kind: input, shape index: {}]   ;;  %s6310_s10 = inlined_call_operand.vmem [shape: bf16[128,512], index: 10, kind: input, shape index: {}]   ;;  %s6311_s11 = inlined_call_operand.vmem [shape: bf16[512,128], index: 11, kind: input, shape index: {}]   ;;  %s6312_s12 = inlined_call_operand.hbm [shape: f32[2,16,128], index: 12, kind: output, shape index: {}]  }
   0x1   :  { %6329 = sst [smem:[#allocation23_spill]] %s6300_s0 }
   0x2   :  { %6330 = sst [smem:[#allocation24_spill]] %s6301_s1 }
   0x3   :  { %6331 = sst [smem:[#allocation25_spill]] %s6303_s3 }
   0x4   :  { %6332 = sst [smem:[#allocation26_spill]] %s6308_s8 }
   0x5   :  { %6333 = sst [smem:[#allocation27_spill]] %s6309_s9 }
   0x6   :  { %6334 = sst [smem:[#allocation28_spill]] %s6310_s10 }
   0x7   :  { %6335 = sst [smem:[#allocation29_spill]] %s6311_s11 }
   0x8   :  { %6336 = sst [smem:[#allocation30_spill]] %s6312_s12 }
   0x9   :  { %17 = vsyncpa [#allocation3], 0 }
   0xa   :  { %19 = vsyncpa [#allocation3 + $0x1], 0 }
   0xb   :  { %20 = vsyncpa [#allocation6], 0 }
   0xc   :  { %22 = vsyncpa [#allocation6 + $0x1], 0 }
   0xd   :  { %23 = vsyncpa [#allocation9], 0 }
   0xe   :  { %25 = vsyncpa [#allocation9 + $0x1], 0 }
   0xf   :  { %26 = vsyncpa [#allocation4], 0 }
  0x10   :  { %28 = vsyncpa [#allocation4 + $0x1], 0  ;;  %s5156_s21 = smov 0   ;;  %s5158_s22 = smov 0  }
  0x11   :  { %s5160_s23 = smov 0   ;;  %s5162_s24 = smov 0  }
  0x12 LB: > { %6337 = sst [smem:[#allocation16_spill]] %s5064_s21  ;;  %s5177_s25 = sadd.s32 4294967295, %s5076_s24   ;;  %s5076_s24 = sphi %s5162_s24, %s6369_s24   ;;  %s5072_s23 = sphi %s5160_s23, %s6374_s23   ;;  %s5068_s22 = sphi %s5158_s22, %s6373_s22   ;;  %s5064_s21 = sphi %s5156_s21, %s6372_s21  }
  0x13   : > { %6338 = sst [smem:[#allocation17_spill]] %s5072_s23  ;;  %s3741_s26 = sadd.s32 4294967294, %s5076_s24  }
  0x14   : > { %6339 = sst [smem:[#allocation18_spill]] %s5076_s24  ;;  %s5181_s27 = sadd.s32 1, %s5076_s24  }
  0x15   : > { %6340 = sst [smem:[#allocation19_spill]] %s5181_s27  ;;  %s41_s28 = sadd.s32 1, %s5072_s23 }
  0x16   : > { %s38_s29 = ssub.s32 %s5076_s24, %s5181_s27  ;;  %p48_p0 = scmp.ne.s32.totalorder %s5072_s23, %s5068_s22 }
  0x17   : > { %p39_p1 = scmp.eq.s32.totalorder %s38_s29, 0  ;;  %p49_p2 = scmp.eq.s32.totalorder %s5076_s24, 0 }
  0x18   : > { %p54_p3 = scmp.ne.s32.totalorder %s5068_s22, %s5064_s21  ;;  %p55_p4 = scmp.eq.s32.totalorder %s5177_s25, 0 }
  0x19   : > { %s5193_s30 = scalar_select %p39_p1, %s5072_s23, %s41_s28  }
  0x1a   : > { %p50_p5 = por %p49_p2, %p48_p0  ;;  %p5195_p6 = por %p55_p4, %p54_p3 }
  0x1b   : > { %6341 = sst [smem:[#allocation20_spill]] %s5193_s30  ;;  %p329_p7 = scmp.eq.s32.totalorder %s5177_s25, 1 }
  0x1c   : > { %s6342_s13 = scalar_select %p5195_p6, 1, 0 }
  0x1d   : > { %p335_p8 = scmp.eq.s32.totalorder %s3741_s26, 1  ;;  %p4517_p10 = scmp.lt.s32.totalorder %s5076_s24, 2 }
  0x1e   : > { %p5202_p11 = por %p329_p7, %p48_p0  ;;  %s5211_s16 = sand.u32 1, %s5072_s23  }
  0x1f   : > { %p5206_p12 = por %p335_p8, %p54_p3  ;;  %p5213_p13 = pnand %p4517_p10, %p50_p5 }
  0x20   : > { %s6343_s14 = scalar_select %p5202_p11, 1, 0 }
  0x21   : > { %s6345_s15 = scalar_select %p5206_p12, 1, 0 }
  0x22   : > { %6344 = sst [smem:[#allocation21_spill]] %s6343_s14  ;;  %s6319_s18 = sand.u32 1, %s5076_s24  }
  0x23   : > { %6346 = sst [smem:[#allocation22_spill]] %s6345_s15  ;;  %s5219_s19 = sshll.u32 %s5076_s24, 4 }
  0x24   : > { %s400_s20 = scalar_lea.vmem [#allocation5], %s5211_s16  ;;  %s6348_s1 = sld [smem:[#allocation24_spill]] }
  0x25   : > { %s407_s26 = sshll.u32 %s400_s20, 4  ;;  %s5228_s23 = scalar_lea.sflag [#allocation6], %s6319_s18  ;;  %s408_s26 = int_to_ptr.vmem [resolvable:$true] %s407_s26 }
  0x26   : > { %p5232_p1 = pneg %p5213_p13 }
  0x2a   : > { %s405_s30 = scalar_lea.hbm %s6348_s1, %s5219_s19  ;;  %s4869_s28 = scalar_lea.hbm %s6348_s1, 32 }
  0x2b   : > { %s4864_s27 = scalar_lea.hbm %s405_s30, 16  ;;  %p4870_p4 = scmp.lt.s32.totalorder %s405_s30, %s6348_s1 }
  0x2c   : > { %p4865_p0 = scmp.ne.s32.totalorder %s405_s30, %s4864_s27  ;;  %p4871_p5 = scmp.lt.s32.totalorder %s4869_s28, %s4864_s27 }
  0x2e   : > { %p4867_p2 = pnand %p5232_p1, %p4865_p0  ;;  %p4872_p7 = por %p4871_p5, %p4870_p4 }
  0x30   : > { %p4868_p3 = pneg %p4867_p2 }
  0x32   : > { %p4873_p8 = pnand %p4872_p7, %p4868_p3 }
  0x34   : > { %4876 = shalt.err (!%p4873_p8)
}
  0x35   : > { %s4877_s18 = scalar_lea.vmem %s408_s26, 16  ;;  %s5078_s14 = smov [#allocation5]  }
  0x36   : > { %p4878_p10 = scmp.ne.s32.totalorder %s408_s26, %s4877_s18  ;;  %s4882_s11 = sshll.u32 %s5078_s14, 4  ;;  %s4883_s11 = int_to_ptr.vmem [resolvable:$false] %s4882_s11 }
  0x37   : > { %s4884_s10 = scalar_lea.vmem %s4883_s11, 32  ;;  %p4885_p0 = scmp.lt.s32.totalorder %s408_s26, %s4883_s11 }
  0x38   : > { %p4880_p9 = pnand %p4878_p10, %p5232_p1  ;;  %p4886_p2 = scmp.lt.s32.totalorder %s4884_s10, %s4877_s18 }
  0x3a   : > { %p4881_p12 = pneg %p4880_p9  ;;  %p4887_p11 = por %p4886_p2, %p4885_p0 }
  0x3c   : > { %p4888_p6 = pnand %p4887_p11, %p4881_p12 }
  0x3e   : > { %4891 = shalt.err (!%p4888_p6)
}
  0x3f   : > { %4503 = dma.hbm_to_vmem [thread:$0]  (!%p5213_p13), %s405_s30, 16, %s408_s26, %s5228_s23  }
  0x40   : > { %p3751_p9 = scmp.ge.s32.totalorder %s5076_s24, 1  ;;  %p463_p3 = scmp.lt.s32.totalorder %s5076_s24, 3 }
  0x41   : > { %s6351_s3 = sld [smem:[#allocation25_spill]]  ;;  %s434_s27 = scalar_lea.vmem [#allocation8], %s5211_s16 }
  0x42   : > { %p5251_p4 = pnand %p3751_p9, %p463_p3  ;;  %s441_s14 = sshll.u32 %s434_s27, 4  ;;  %s442_s14 = int_to_ptr.vmem [resolvable:$true] %s441_s14 }
  0x43   : > { %s3744_s18 = sshll.u32 %s5211_s16, 4  ;;  %s6352_s20 = sand.u32 1, %s5076_s24  }
  0x44   : > { %s6350_s12 = scalar_select %p5251_p4, 1, 0 }
  0x45   : > { %s5265_s30 = scalar_lea.sflag [#allocation9], %s6352_s20 }
  0x47   : > { %s5259_s21 = scalar_lea.hbm %s6351_s3, %s5219_s19  ;;  %s4897_s10 = scalar_lea.hbm %s6351_s3, 32 }
  0x48   : > { %s4892_s26 = scalar_lea.hbm %s5259_s21, 16  ;;  %p4898_p5 = scmp.lt.s32.totalorder %s5259_s21, %s6351_s3 }
  0x49   : > { %p4893_p6 = scmp.ne.s32.totalorder %s5259_s21, %s4892_s26  ;;  %p4899_p7 = scmp.lt.s32.totalorder %s4897_s10, %s4892_s26 }
  0x4b   : > { %p4895_p11 = pnand %p4893_p6, %p5232_p1  ;;  %p4900_p8 = por %p4899_p7, %p4898_p5 }
  0x4d   : > { %p4896_p12 = pneg %p4895_p11 }
  0x4f   : > { %p4901_p10 = pnand %p4900_p8, %p4896_p12 }
  0x51   : > { %4904 = shalt.err (!%p4901_p10)
}
  0x52   : > { %s4905_s27 = scalar_lea.vmem %s442_s14, 16  ;;  %s5079_s20 = smov [#allocation8]  }
  0x53   : > { %p4906_p0 = scmp.ne.s32.totalorder %s442_s14, %s4905_s27  ;;  %s4910_s9 = sshll.u32 %s5079_s20, 4  ;;  %s4911_s9 = int_to_ptr.vmem [resolvable:$false] %s4910_s9 }
  0x54   : > { %s4912_s8 = scalar_lea.vmem %s4911_s9, 32  ;;  %p4913_p3 = scmp.lt.s32.totalorder %s442_s14, %s4911_s9 }
  0x55   : > { %p4908_p2 = pnand %p4906_p0, %p5232_p1  ;;  %p4914_p6 = scmp.lt.s32.totalorder %s4912_s8, %s4905_s27 }
  0x57   : > { %p4909_p9 = pneg %p4908_p2  ;;  %p4915_p11 = por %p4914_p6, %p4913_p3 }
  0x59   : > { %p4916_p4 = pnand %p4915_p11, %p4909_p9 }
  0x5b   : > { %4919 = shalt.err (!%p4916_p4)
}
  0x5c   : > { %4509 = dma.hbm_to_vmem [thread:$0]  (!%p5213_p13), %s5259_s21, 16, %s442_s14, %s5265_s30  }
  0x5d   : > { %s3983_s1 = sshll.u32 %s5076_s24, 8  ;;  %s6353_s0 = sld [smem:[#allocation23_spill]] }
  0x5e   : > { %s380_s8 = scalar_lea.vmem [#allocation2], %s3744_s18  ;;  %s377_s10 = scalar_lea.sflag [#allocation3], %s5211_s16 }
  0x5f   : > { %s387_s9 = sshll.u32 %s380_s8, 4  ;;  %s5290_s9 = int_to_ptr.vmem [resolvable:$true] %s387_s9 }
  0x63   : > { %s5288_s29 = scalar_lea.hbm %s6353_s0, %s3983_s1  ;;  %s4925_s27 = scalar_lea.hbm %s6353_s0, 512 }
  0x64   : > { %s4920_s11 = scalar_lea.hbm %s5288_s29, 256  ;;  %p4926_p7 = scmp.lt.s32.totalorder %s5288_s29, %s6353_s0 }
  0x65   : > { %p4921_p4 = scmp.ne.s32.totalorder %s5288_s29, %s4920_s11  ;;  %p4927_p8 = scmp.lt.s32.totalorder %s4925_s27, %s4920_s11 }
  0x67   : > { %p4923_p12 = pnand %p4921_p4, %p5232_p1  ;;  %p4928_p10 = por %p4927_p8, %p4926_p7 }
  0x69   : > { %p4924_p5 = pneg %p4923_p12 }
  0x6b   : > { %p4929_p0 = pnand %p4928_p10, %p4924_p5 }
  0x6d   : > { %4932 = shalt.err (!%p4929_p0)
}
  0x6e   : > { %s4933_s18 = scalar_lea.vmem %s5290_s9, 256  ;;  %s5080_s26 = smov [#allocation2]  }
  0x6f   : > { %p4934_p2 = scmp.ne.s32.totalorder %s5290_s9, %s4933_s18  ;;  %s4938_s28 = sshll.u32 %s5080_s26, 4  ;;  %s4939_s28 = int_to_ptr.vmem [resolvable:$false] %s4938_s28 }
  0x70   : > { %s4940_s8 = scalar_lea.vmem %s4939_s28, 512  ;;  %p4941_p6 = scmp.lt.s32.totalorder %s5290_s9, %s4939_s28 }
  0x71   : > { %p4936_p9 = pnand %p4934_p2, %p5232_p1  ;;  %p4942_p11 = scmp.lt.s32.totalorder %s4940_s8, %s4933_s18 }
  0x73   : > { %p4937_p3 = pneg %p4936_p9  ;;  %p4943_p4 = por %p4942_p11, %p4941_p6 }
  0x75   : > { %p4944_p12 = pnand %p4943_p4, %p4937_p3 }
  0x77   : > { %4947 = shalt.err (!%p4944_p12)
}
  0x78   : > { %s5081_s11 = smov 128   ;;  %s5082_s21 = smov 8  }
  0x79   : > { %4500 = dma.hbm_to_vmem [thread:$0]  (!%p5213_p13), %s5288_s29, 256, %s5290_s9, %s377_s10, %s5081_s11, %s5081_s11, %s5082_s21  }
  0x7a   : > { %s422_s20 = scalar_lea.hbm %s6302_s2, %s5219_s19  ;;  %s417_s1 = scalar_lea.vmem [#allocation7], %s5211_s16 }
  0x7b   : > { %s424_s18 = sshll.u32 %s417_s1, 4  ;;  %s4948_s26 = scalar_lea.hbm %s422_s20, 16  ;;  %s425_s18 = int_to_ptr.vmem [resolvable:$true] %s424_s18 }
  0x7c   : > { %p4949_p5 = scmp.ne.s32.totalorder %s422_s20, %s4948_s26  ;;  %s4953_s0 = scalar_lea.hbm %s6302_s2, 32 }
  0x7d   : > { %p4954_p10 = scmp.lt.s32.totalorder %s422_s20, %s6302_s2  ;;  %p4955_p0 = scmp.lt.s32.totalorder %s4953_s0, %s4948_s26 }
  0x7e   : > { %p4951_p7 = pnand %p4949_p5, %p5232_p1 }
  0x7f   : > { %p4956_p2 = por %p4955_p0, %p4954_p10 }
  0x80   : > { %p4952_p8 = pneg %p4951_p7 }
  0x82   : > { %p4957_p9 = pnand %p4956_p2, %p4952_p8 }
  0x84   : > { %4960 = shalt.err (!%p4957_p9)
}
  0x85   : > { %s4961_s29 = scalar_lea.vmem %s425_s18, 16  ;;  %s5083_s9 = smov [#allocation7]  }
  0x86   : > { %p4962_p3 = scmp.ne.s32.totalorder %s425_s18, %s4961_s29  ;;  %s4966_s10 = sshll.u32 %s5083_s9, 4  ;;  %s4967_s10 = int_to_ptr.vmem [resolvable:$false] %s4966_s10 }
  0x87   : > { %s4968_s11 = scalar_lea.vmem %s4967_s10, 32  ;;  %p4969_p4 = scmp.lt.s32.totalorder %s425_s18, %s4967_s10 }
  0x88   : > { %p4964_p6 = pnand %p4962_p3, %p5232_p1  ;;  %p4970_p12 = scmp.lt.s32.totalorder %s4968_s11, %s4961_s29 }
  0x8a   : > { %p4965_p11 = pneg %p4964_p6  ;;  %p4971_p5 = por %p4970_p12, %p4969_p4 }
  0x8c   : > { %p4972_p7 = pnand %p4971_p5, %p4965_p11 }
  0x8e   : > { %4975 = shalt.err (!%p4972_p7)
}
  0x8f   : > { %4506 = dma.hbm_to_vmem [thread:$0]  (!%p5213_p13), %s422_s20, 16, %s425_s18, %s5228_s23  }
  0x90   : > { %s456_s24 = scalar_lea.hbm %s6304_s4, %s5219_s19  ;;  %s451_s21 = scalar_lea.vmem [#allocation10], %s5211_s16 }
  0x91   : > { %s458_s14 = sshll.u32 %s451_s21, 4  ;;  %s4976_s27 = scalar_lea.hbm %s456_s24, 16  ;;  %s459_s14 = int_to_ptr.vmem [resolvable:$true] %s458_s14 }
  0x92   : > { %p4977_p8 = scmp.ne.s32.totalorder %s456_s24, %s4976_s27  ;;  %s4981_s28 = scalar_lea.hbm %s6304_s4, 32 }
  0x93   : > { %p4982_p2 = scmp.lt.s32.totalorder %s456_s24, %s6304_s4  ;;  %p4983_p9 = scmp.lt.s32.totalorder %s4981_s28, %s4976_s27 }
  0x94   : > { %p4979_p10 = pnand %p4977_p8, %p5232_p1 }
  0x95   : > { %p4984_p3 = por %p4983_p9, %p4982_p2 }
  0x96   : > { %p4980_p0 = pneg %p4979_p10 }
  0x98   : > { %p4985_p6 = pnand %p4984_p3, %p4980_p0 }
  0x9a   : > { %4988 = shalt.err (!%p4985_p6)
}
  0x9b   : > { %s4989_s23 = scalar_lea.vmem %s459_s14, 16  ;;  %s5084_s16 = smov [#allocation10]  }
  0x9c   : > { %p4990_p11 = scmp.ne.s32.totalorder %s459_s14, %s4989_s23  ;;  %s4994_s19 = sshll.u32 %s5084_s16, 4  ;;  %s4995_s19 = int_to_ptr.vmem [resolvable:$false] %s4994_s19 }
  0x9d   : > { %s4996_s20 = scalar_lea.vmem %s4995_s19, 32  ;;  %p4997_p5 = scmp.lt.s32.totalorder %s459_s14, %s4995_s19 }
  0x9e   : > { %p4992_p4 = pnand %p4990_p11, %p5232_p1  ;;  %p4998_p7 = scmp.lt.s32.totalorder %s4996_s20, %s4989_s23 }
  0xa0   : > { %p4993_p12 = pneg %p4992_p4  ;;  %p4999_p8 = por %p4998_p7, %p4997_p5 }
  0xa2   : > { %p5000_p10 = pnand %p4999_p8, %p4993_p12 }
  0xa4   : > { %5003 = shalt.err (!%p5000_p10)
}
  0xa5   : > { %4512 = dma.hbm_to_vmem [thread:$0]  (!%p5213_p13), %s456_s24, 16, %s459_s14, %s5265_s30  }
  0xa6   : > { %p6354_p0 = scmp.ne.s32.totalorder %s6350_s12, 0 }
  0xa7   : > { %s5354_s15 = sand.u32 (!%p6354_p0), 1, %s5068_s22   ;;  %p6355_p1 = scmp.ne.s32.totalorder (!%p6354_p0), %s6342_s13, 0 }
  0xa8   : > { %467 = sbr.rel (%p6354_p0) target bundleno = 2190 (0x88e), region = 68  ;;  %s3752_s18 = sshll.u32 (!%p6354_p0), %s5354_s15, 4 }
  0xa9   : > { %s470_s9 = scalar_lea.sflag (!%p6354_p0), [#allocation3], %s5354_s15  ;;  %s5360_s10 = scalar_lea.vmem (!%p6354_p0), [#allocation2], %s3752_s18 }
  0xad   : > { %5047 = dma.done.wait (%p6355_p1), %s470_s9, 256  }
  0xae   : > { %5049 = vsyncadd (%p6355_p1), %s470_s9, 4294967040  ;;  %s478_s17 = sand.u32 1, %s5177_s25   ;;  %s481_s30 = scalar_lea.vmem [#allocation5], %s5354_s15 }
  0xaf   : > { %s479_s12 = scalar_lea.sflag [#allocation6], %s478_s17 }
  0xb0   : > { %5051 = dma.done.wait (%p6355_p1), %s479_s12, 32  }
  0xb1   : > { %5053 = vsyncadd (%p6355_p1), %s479_s12, 4294967264  ;;  %s489_s11 = scalar_lea.vmem [#allocation7], %s5354_s15  ;;  %s495_s0 = scalar_lea.sflag [#allocation9], %s478_s17 }
  0xb2   : > { %s497_s3 = scalar_lea.vmem [#allocation8], %s5354_s15 }
  0xb3   : > { %5055 = dma.done.wait (%p6355_p1), %s495_s0, 32  }
  0xb4   : > { %5057 = vsyncadd (%p6355_p1), %s495_s0, 4294967264  ;;  %v5085_v0 = vmov 0.0   ;;  %v5381_v1 = vld [vmem:[%s5360_s10] sm:$0xff]  ;;  %v5384_v2 = vld [vmem:[%s5360_s10 + $0x8] sm:$0xff]  ;;  %vm5086_vm0 = vmmov 0   ;;  %vm1867_vm1 = vcmask 261120  }
  0xb5   : > { %4165 = vmatprep.subr.bf16.mxu0 %v5085_v0  ;;  %4185 = vmatprep.subr.bf16.mxu1 %v5085_v0  ;;  %v567_v3 = vmul.f32 %v5381_v1, %v5381_v1  ;;  %v4558_v4 = vld [vmem:[%s6305_s5 + $0x38] sm:$0xff]   ;;  %v568_v6 = vmul.f32 %v5384_v2, %v5384_v2  ;;  %v4560_v7 = vld [vmem:[%s6305_s5 + $0x30] sm:$0xff]   ;;  %v4562_v9 = vld [vmem:[%s6305_s5 + $0x28] sm:$0xff]   ;;  %vm2056_vm2 = vcmask 130048   ;;  %s6356_s12 = sld [smem:[#allocation26_spill]]  ;;  %s505_s1 = scalar_lea.vmem [#allocation10], %s5354_s15 }
  0xb6   : > { %v4559_v5 = vld [vmem:[%s6305_s5 + $0x78] sm:$0xff]   ;;  %4166 = vmatpush3.bf16.msra.mxu0 %v4558_v4  ;;  %v4561_v8 = vld [vmem:[%s6305_s5 + $0x70] sm:$0xff]   ;;  %v4563_v10 = vld [vmem:[%s6305_s5 + $0x68] sm:$0xff]   ;;  %4181 = vmatprep.mubr.msk.bf16.mxu0 %vm5086_vm0, %v5085_v0  ;;  %s6357_s20 = sld [smem:[#allocation27_spill]]  ;;  %s561_s21 = scalar_lea.vmem [#allocation11], %s3752_s18 }
  0xb7   : > { %569 = vadd.xlane.f32.xlu0 %v567_v3  ;;  %4186 = vmatpush3.bf16.msra.mxu1 %v4559_v5  ;;  %v4564_v11 = vld [vmem:[%s6305_s5 + $0x20] sm:$0xff]   ;;  %v4566_v13 = vld [vmem:[%s6305_s5 + $0x18] sm:$0xff]   ;;  %v4568_v15 = vld [vmem:[%s6305_s5 + $0x10] sm:$0xff]   ;;  %s6358_s13 = sld [smem:[#allocation28_spill]]  ;;  %s3594_s27 = sshll.u32 %s561_s21, 4  ;;  %s6251_s27 = int_to_ptr.vmem [resolvable:$true] %s3594_s27 }
  0xb8   : > { %4167 = vmatprep.subr.bf16.mxu0 %v5085_v0  ;;  %4187 = vmatprep.subr.bf16.mxu1 %v5085_v0  ;;  %v4565_v12 = vld [vmem:[%s6305_s5 + $0x60] sm:$0xff]   ;;  %v4567_v14 = vld [vmem:[%s6305_s5 + $0x58] sm:$0xff]   ;;  %v4569_v16 = vld [vmem:[%s6305_s5 + $0x50] sm:$0xff]   ;;  %s6359_s23 = sld [smem:[#allocation29_spill]]  ;;  %s3581_s18 = scalar_lea.sflag [#allocation4], %s5354_s15 }
  0xb9   : > { %v4570_v17 = vld [vmem:[%s6305_s5 + $0x8] sm:$0xff]   ;;  %v4572_v19 = vld [vmem:[%s6305_s5] sm:$0xff]   ;;  %4201 = vmatprep.mubr.msk.bf16.mxu1 %vm5086_vm0, %v5085_v0  ;;  %v4574_v37 = vld [vmem:[%s6305_s5 + $0xb8] sm:$0xff]   ;;  %s6361_s14 = sld [smem:[#allocation21_spill]] }
  0xba   : > { %4168 = vmatpush3.bf16.msra.mxu0 %v4560_v7  ;;  %v4571_v18 = vld [vmem:[%s6305_s5 + $0x48] sm:$0xff]   ;;  %v4573_v20 = vld [vmem:[%s6305_s5 + $0x40] sm:$0xff]   ;;  %v4575_v38 = vld [vmem:[%s6305_s5 + $0xf8] sm:$0xff]   ;;  %s6362_s8 = sld [smem:[#allocation30_spill]] }
  0xbb   : > { %571 = vadd.xlane.f32.xlu0 %v568_v6  ;;  %4188 = vmatpush3.bf16.msra.mxu1 %v4561_v8  ;;  %v3754_v27 = vld [vmem:[%s481_s30] ss:$0 sm:$0xff]  ;;  %v4576_v40 = vld [vmem:[%s6305_s5 + $0xb0] sm:$0xff]   ;;  %v4578_v42 = vld [vmem:[%s6305_s5 + $0xa8] sm:$0xff]  }
  0xbc   : > { %4169 = vmatprep.subr.bf16.mxu0 %v5085_v0  ;;  %4189 = vmatprep.subr.bf16.mxu1 %v5085_v0  ;;  %v582_v28 = vmul.f32 %v3754_v27, %v5381_v1  ;;  %v583_v30 = vmul.f32 %v3754_v27, %v5384_v2  ;;  %v3755_v33 = vld [vmem:[%s489_s11] ss:$0 sm:$0xff]  ;;  %v4577_v41 = vld [vmem:[%s6305_s5 + $0xf0] sm:$0xff]   ;;  %v4579_v43 = vld [vmem:[%s6305_s5 + $0xe8] sm:$0xff]  }
  0xbd   : > { %v4580_v44 = vld [vmem:[%s6305_s5 + $0xa0] sm:$0xff]   ;;  %v4582_v46 = vld [vmem:[%s6305_s5 + $0x98] sm:$0xff]   ;;  %v4584_v48 = vld [vmem:[%s6305_s5 + $0x90] sm:$0xff]  }
  0xbe   : > { %4170 = vmatpush3.bf16.msra.mxu0 %v4562_v9  ;;  %v4581_v45 = vld [vmem:[%s6305_s5 + $0xe0] sm:$0xff]   ;;  %v4583_v47 = vld [vmem:[%s6305_s5 + $0xd8] sm:$0xff]   ;;  %v4585_v49 = vld [vmem:[%s6305_s5 + $0xd0] sm:$0xff]   ;;  %s6360_s16 = smov %s6359_s23 }
  0xbf   : > { %4190 = vmatpush3.bf16.msra.mxu1 %v4563_v10  ;;  %4171 = vmatprep.subr.bf16.mxu0 %v5085_v0  ;;  %v4586_v50 = vld [vmem:[%s6305_s5 + $0x88] sm:$0xff]   ;;  %v4588_v52 = vld [vmem:[%s6305_s5 + $0x80] sm:$0xff]   ;;  %v4590_v54 = vld [vmem:[%s6306_s6 + $0x38] sm:$0xff]   ;;  %p6363_p2 = scmp.ne.s32.totalorder %s6361_s14, 0 }
  0xc0   : > { %4191 = vmatprep.subr.bf16.mxu1 %v5085_v0  ;;  %v4587_v51 = vld [vmem:[%s6305_s5 + $0xc8] sm:$0xff]   ;;  %v4589_v53 = vld [vmem:[%s6305_s5 + $0xc0] sm:$0xff]   ;;  %v4591_v55 = vld [vmem:[%s6306_s6 + $0x78] sm:$0xff]  }
  0xc1   : > { %v4592_v56 = vld [vmem:[%s6306_s6 + $0x30] sm:$0xff]   ;;  %v4594_v58 = vld [vmem:[%s6306_s6 + $0x28] sm:$0xff]   ;;  %v4596_v60 = vld [vmem:[%s6306_s6 + $0x20] sm:$0xff]  }
  0xc2   : > { %4172 = vmatpush3.bf16.msra.mxu0 %v4564_v11  ;;  %v4593_v57 = vld [vmem:[%s6306_s6 + $0x70] sm:$0xff]   ;;  %v4595_v59 = vld [vmem:[%s6306_s6 + $0x68] sm:$0xff]   ;;  %v4597_v61 = vld [vmem:[%s6306_s6 + $0x60] sm:$0xff]  }
  0xc3   : > { %4192 = vmatpush3.bf16.msra.mxu1 %v4565_v12  ;;  %4173 = vmatprep.subr.bf16.mxu0 %v5085_v0  ;;  %v4598_v62 = vld [vmem:[%s6306_s6 + $0x18] sm:$0xff]   ;;  %v4600_v1 = vld [vmem:[%s6306_s6 + $0x10] sm:$0xff]   ;;  %v4602_v3 = vld [vmem:[%s6306_s6 + $0x8] sm:$0xff]  }
  0xc4   : > { %4193 = vmatprep.subr.bf16.mxu1 %v5085_v0  ;;  %v4599_v63 = vld [vmem:[%s6306_s6 + $0x58] sm:$0xff]   ;;  %v4601_v2 = vld [vmem:[%s6306_s6 + $0x50] sm:$0xff]   ;;  %v4603_v4 = vld [vmem:[%s6306_s6 + $0x48] sm:$0xff]  }
  0xc5   : > { %v4604_v5 = vld [vmem:[%s6306_s6] sm:$0xff]   ;;  %v4606_v7 = vld [vmem:[%s6306_s6 + $0xb8] sm:$0xff]   ;;  %v4608_v9 = vld [vmem:[%s6306_s6 + $0xb0] sm:$0xff]  }
  0xc6   : > { %4174 = vmatpush3.bf16.msra.mxu0 %v4566_v13  ;;  %v4605_v6 = vld [vmem:[%s6306_s6 + $0x40] sm:$0xff]   ;;  %v4607_v8 = vld [vmem:[%s6306_s6 + $0xf8] sm:$0xff]   ;;  %v4609_v10 = vld [vmem:[%s6306_s6 + $0xf0] sm:$0xff]  }
  0xc7   : > { %4194 = vmatpush3.bf16.msra.mxu1 %v4567_v14  ;;  %4175 = vmatprep.subr.bf16.mxu0 %v5085_v0  ;;  %v4610_v11 = vld [vmem:[%s6306_s6 + $0xa8] sm:$0xff]   ;;  %v4612_v13 = vld [vmem:[%s6306_s6 + $0xa0] sm:$0xff]  }
  0xc8   : > { %4195 = vmatprep.subr.bf16.mxu1 %v5085_v0  ;;  %v4611_v12 = vld [vmem:[%s6306_s6 + $0xe8] sm:$0xff]   ;;  %v4613_v14 = vld [vmem:[%s6306_s6 + $0xe0] sm:$0xff]  }
  0xc9   : > { %v4626_v27 = vld [vmem:[%s6307_s7 + $0x28] sm:$0xff]  }
  0xca   : > { %4176 = vmatpush3.bf16.msra.mxu0 %v4568_v15  ;;  %v4614_v15 = vld [vmem:[%s6306_s6 + $0x98] sm:$0xff]  }
  0xcb   : > { %4196 = vmatpush3.bf16.msra.mxu1 %v4569_v16  ;;  %4177 = vmatprep.subr.bf16.mxu0 %v5085_v0  ;;  %v4615_v16 = vld [vmem:[%s6306_s6 + $0xd8] sm:$0xff]  }
  0xcc   : > { %4197 = vmatprep.subr.bf16.mxu1 %v5085_v0 }
  0xce   : > { %4178 = vmatpush3.bf16.msra.mxu0 %v4570_v17  ;;  %v4616_v17 = vld [vmem:[%s6306_s6 + $0x90] sm:$0xff]  }
  0xcf   : > { %4198 = vmatpush3.bf16.msra.mxu1 %v4571_v18  ;;  %4179 = vmatprep.subr.bf16.mxu0 %v5085_v0  ;;  %v4617_v18 = vld [vmem:[%s6306_s6 + $0xd0] sm:$0xff]  }
  0xd0   : > { %4199 = vmatprep.subr.bf16.mxu1 %v5085_v0 }
  0xd2   : > { %4180 = vmatpush3.bf16.msra.mxu0 %v4572_v19  ;;  %v4618_v19 = vld [vmem:[%s6306_s6 + $0x88] sm:$0xff]  }
  0xd3   : > { %4200 = vmatpush3.bf16.msra.mxu1 %v4573_v20  ;;  %4205 = vmatprep.subr.bf16.mxu0 %v5085_v0  ;;  %v4619_v20 = vld [vmem:[%s6306_s6 + $0xc8] sm:$0xff]  }
  0xd4   : > { %4225 = vmatprep.subr.bf16.mxu1 %v5085_v0 }
 0x140   : > { %v570_v21 = vpop.xlane.xlu0 %569 }
 0x141   : > { %v574_v22 = vmul.f32 0.0078125, %v570_v21  ;;  %v4620_v21 = vld [vmem:[%s6306_s6 + $0x80] sm:$0xff]  }
 0x143   : > { %v584_v23 = vadd.f32 1e-06, %v574_v22  ;;  %v4621_v22 = vld [vmem:[%s6306_s6 + $0xc0] sm:$0xff]  }
 0x144   : > { %v572_v24 = vpop.xlane.xlu0 %571 }
 0x145   : > { %4790 = vrsqrt.f32 %v584_v23  ;;  %v575_v25 = vmul.f32 0.0078125, %v572_v24  ;;  %v4622_v23 = vld [vmem:[%s6307_s7 + $0x38] sm:$0xff]  }
 0x146   : > { %v4623_v24 = vld [vmem:[%s6307_s7 + $0x78] sm:$0xff]  }
 0x147   : > { %v585_v26 = vadd.f32 1e-06, %v575_v25  ;;  %v4624_v25 = vld [vmem:[%s6307_s7 + $0x30] sm:$0xff]  }
 0x149   : > { %4792 = vrsqrt.f32 %v585_v26  ;;  %v4625_v26 = vld [vmem:[%s6307_s7 + $0x70] sm:$0xff]  }
 0x152   : > { %v4791_v29 = vpop.eup %4790 }
 0x153   : > { %v588_v31 = vmul.f32 %v4791_v29, %v582_v28  ;;  %v4627_v28 = vld [vmem:[%s6307_s7 + $0x68] sm:$0xff]   ;;  %v4628_v29 = vld [vmem:[%s6307_s7 + $0x20] sm:$0xff]  }
 0x155   : > { %v596_v35 = vadd.f32 %v3755_v33, %v588_v31  ;;  %v4630_v31 = vld [vmem:[%s6307_s7 + $0x18] sm:$0xff]  }
 0x156   : > { %v4793_v32 = vpop.eup %4792 }
 0x157   : > { %v589_v34 = vmul.f32 %v4793_v32, %v583_v30  ;;  %v4629_v30 = vld [vmem:[%s6307_s7 + $0x60] sm:$0xff]   ;;  %v4631_v32 = vld [vmem:[%s6307_s7 + $0x58] sm:$0xff]  }
 0x159   : > { %v597_v36 = vadd.f32 %v3755_v33, %v589_v34  ;;  %v4632_v33 = vld [vmem:[%s6307_s7 + $0x10] sm:$0xff]  }
 0x15a   : > { %v4633_v34 = vld [vmem:[%s6307_s7 + $0x50] sm:$0xff]  }
 0x15b   : > { %v5470_v39 = vpack.c.bf16 %v597_v36, %v596_v35  ;;  %v4634_v35 = vld [vmem:[%s6307_s7 + $0x8] sm:$0xff]  }
 0x15c   : > { %v4635_v36 = vld [vmem:[%s6307_s7 + $0x48] sm:$0xff]  }
 0x15d   : > { %4182 = vmatmul.mubr.bf16.vlgmr.msra.gmra.mxu0 %v5470_v39  ;;  %4202 = vmatmul.mubr.bf16.vlgmr.msra.gmra.mxu1 %v5470_v39 }
 0x15e   : > { %4206 = vmatpush3.bf16.msra.mxu0 %v4574_v37  ;;  %4226 = vmatpush3.bf16.msra.mxu1 %v4575_v38  ;;  %v4636_v37 = vld [vmem:[%s6307_s7] sm:$0xff]  }
 0x15f   : > { %4207 = vmatprep.subr.bf16.mxu0 %v5085_v0  ;;  %4227 = vmatprep.subr.bf16.mxu1 %v5085_v0  ;;  %v4637_v38 = vld [vmem:[%s6307_s7 + $0x40] sm:$0xff]  }
 0x160   : > { %4221 = vmatprep.mubr.msk.bf16.mxu0 %vm5086_vm0, %v5085_v0  ;;  %4241 = vmatprep.mubr.msk.bf16.mxu1 %vm5086_vm0, %v5085_v0 }
 0x162   : > { %4208 = vmatpush3.bf16.msra.mxu0 %v4576_v40  ;;  %4228 = vmatpush3.bf16.msra.mxu1 %v4577_v41  ;;  %v4638_v40 = vld [vmem:[%s6307_s7 + $0xb8] sm:$0xff]  }
 0x163   : > { %4209 = vmatprep.subr.bf16.mxu0 %v5085_v0  ;;  %4229 = vmatprep.subr.bf16.mxu1 %v5085_v0  ;;  %v4639_v41 = vld [vmem:[%s6307_s7 + $0xf8] sm:$0xff]  }
 0x166   : > { %4210 = vmatpush3.bf16.msra.mxu0 %v4578_v42  ;;  %4230 = vmatpush3.bf16.msra.mxu1 %v4579_v43  ;;  %v4640_v42 = vld [vmem:[%s6307_s7 + $0xb0] sm:$0xff]  }
 0x167   : > { %4211 = vmatprep.subr.bf16.mxu0 %v5085_v0  ;;  %4231 = vmatprep.subr.bf16.mxu1 %v5085_v0  ;;  %v4641_v43 = vld [vmem:[%s6307_s7 + $0xf0] sm:$0xff]  }
 0x16a   : > { %4212 = vmatpush3.bf16.msra.mxu0 %v4580_v44  ;;  %4232 = vmatpush3.bf16.msra.mxu1 %v4581_v45  ;;  %v4642_v44 = vld [vmem:[%s6307_s7 + $0xa8] sm:$0xff]  }
 0x16b   : > { %4213 = vmatprep.subr.bf16.mxu0 %v5085_v0  ;;  %4233 = vmatprep.subr.bf16.mxu1 %v5085_v0  ;;  %v4643_v45 = vld [vmem:[%s6307_s7 + $0xe8] sm:$0xff]  }
 0x16e   : > { %4214 = vmatpush3.bf16.msra.mxu0 %v4582_v46  ;;  %4234 = vmatpush3.bf16.msra.mxu1 %v4583_v47  ;;  %v4644_v46 = vld [vmem:[%s6307_s7 + $0xa0] sm:$0xff]  }
 0x16f   : > { %4215 = vmatprep.subr.bf16.mxu0 %v5085_v0  ;;  %4235 = vmatprep.subr.bf16.mxu1 %v5085_v0  ;;  %v4645_v47 = vld [vmem:[%s6307_s7 + $0xe0] sm:$0xff]  }
 0x172   : > { %4216 = vmatpush3.bf16.msra.mxu0 %v4584_v48  ;;  %4236 = vmatpush3.bf16.msra.mxu1 %v4585_v49  ;;  %v4646_v48 = vld [vmem:[%s6307_s7 + $0x98] sm:$0xff]  }
 0x173   : > { %4217 = vmatprep.subr.bf16.mxu0 %v5085_v0  ;;  %4237 = vmatprep.subr.bf16.mxu1 %v5085_v0  ;;  %v4647_v49 = vld [vmem:[%s6307_s7 + $0xd8] sm:$0xff]  }
 0x176   : > { %4218 = vmatpush3.bf16.msra.mxu0 %v4586_v50  ;;  %4238 = vmatpush3.bf16.msra.mxu1 %v4587_v51  ;;  %v4648_v50 = vld [vmem:[%s6307_s7 + $0x90] sm:$0xff]  }
 0x177   : > { %4219 = vmatprep.subr.bf16.mxu0 %v5085_v0  ;;  %4239 = vmatprep.subr.bf16.mxu1 %v5085_v0  ;;  %v4649_v51 = vld [vmem:[%s6307_s7 + $0xd0] sm:$0xff]  }
 0x17a   : > { %4220 = vmatpush3.bf16.msra.mxu0 %v4588_v52  ;;  %4240 = vmatpush3.bf16.msra.mxu1 %v4589_v53  ;;  %v4650_v52 = vld [vmem:[%s6307_s7 + $0x88] sm:$0xff]  }
 0x17b   : > { %4245 = vmatprep.subr.bf16.mxu0 %v5085_v0  ;;  %4265 = vmatprep.subr.bf16.mxu1 %v5085_v0  ;;  %v4651_v53 = vld [vmem:[%s6307_s7 + $0xc8] sm:$0xff]  }
 0x17d   : > { %4222 = vmatmul.mubr.bf16.vlgmr.msra.gmra.mxu0 %v5470_v39  ;;  %4242 = vmatmul.mubr.bf16.vlgmr.msra.gmra.mxu1 %v5470_v39 }
 0x17e   : > { %4246 = vmatpush3.bf16.msra.mxu0 %v4590_v54  ;;  %4266 = vmatpush3.bf16.msra.mxu1 %v4591_v55  ;;  %v4652_v54 = vld [vmem:[%s6307_s7 + $0x80] sm:$0xff]  }
 0x17f   : > { %4247 = vmatprep.subr.bf16.mxu0 %v5085_v0  ;;  %4267 = vmatprep.subr.bf16.mxu1 %v5085_v0  ;;  %v4653_v55 = vld [vmem:[%s6307_s7 + $0xc0] sm:$0xff]  }
 0x180   : > { %4261 = vmatprep.mubr.msk.bf16.mxu0 %vm5086_vm0, %v5085_v0  ;;  %4281 = vmatprep.mubr.msk.bf16.mxu1 %vm5086_vm0, %v5085_v0 }
 0x182   : > { %4248 = vmatpush3.bf16.msra.mxu0 %v4592_v56  ;;  %4268 = vmatpush3.bf16.msra.mxu1 %v4593_v57 }
 0x183   : > { %4249 = vmatprep.subr.bf16.mxu0 %v5085_v0  ;;  %4269 = vmatprep.subr.bf16.mxu1 %v5085_v0 }
 0x186   : > { %4250 = vmatpush3.bf16.msra.mxu0 %v4594_v58  ;;  %4270 = vmatpush3.bf16.msra.mxu1 %v4595_v59 }
 0x187   : > { %4251 = vmatprep.subr.bf16.mxu0 %v5085_v0  ;;  %4271 = vmatprep.subr.bf16.mxu1 %v5085_v0 }
 0x18a   : > { %4252 = vmatpush3.bf16.msra.mxu0 %v4596_v60  ;;  %4272 = vmatpush3.bf16.msra.mxu1 %v4597_v61 }
 0x18b   : > { %4253 = vmatprep.subr.bf16.mxu0 %v5085_v0  ;;  %4273 = vmatprep.subr.bf16.mxu1 %v5085_v0 }
 0x18e   : > { %4254 = vmatpush3.bf16.msra.mxu0 %v4598_v62  ;;  %4274 = vmatpush3.bf16.msra.mxu1 %v4599_v63 }
 0x18f   : > { %4255 = vmatprep.subr.bf16.mxu0 %v5085_v0  ;;  %4275 = vmatprep.subr.bf16.mxu1 %v5085_v0 }
 0x192   : > { %4256 = vmatpush3.bf16.msra.mxu0 %v4600_v1  ;;  %4276 = vmatpush3.bf16.msra.mxu1 %v4601_v2 }
 0x193   : > { %4257 = vmatprep.subr.bf16.mxu0 %v5085_v0  ;;  %4277 = vmatprep.subr.bf16.mxu1 %v5085_v0 }
 0x196   : > { %4258 = vmatpush3.bf16.msra.mxu0 %v4602_v3  ;;  %4278 = vmatpush3.bf16.msra.mxu1 %v4603_v4 }
 0x197   : > { %4259 = vmatprep.subr.bf16.mxu0 %v5085_v0  ;;  %4279 = vmatprep.subr.bf16.mxu1 %v5085_v0 }
 0x19a   : > { %4260 = vmatpush3.bf16.msra.mxu0 %v4604_v5  ;;  %4280 = vmatpush3.bf16.msra.mxu1 %v4605_v6 }
 0x19b   : > { %4285 = vmatprep.subr.bf16.mxu0 %v5085_v0  ;;  %4305 = vmatprep.subr.bf16.mxu1 %v5085_v0 }
 0x19d   : > { %4262 = vmatmul.mubr.bf16.vlgmr.msra.gmra.mxu0 %v5470_v39  ;;  %4282 = vmatmul.mubr.bf16.vlgmr.msra.gmra.mxu1 %v5470_v39 }
 0x19e   : > { %4286 = vmatpush3.bf16.msra.mxu0 %v4606_v7  ;;  %4306 = vmatpush3.bf16.msra.mxu1 %v4607_v8 }
 0x19f   : > { %4287 = vmatprep.subr.bf16.mxu0 %v5085_v0  ;;  %4307 = vmatprep.subr.bf16.mxu1 %v5085_v0 }
 0x1a0   : > { %4301 = vmatprep.mubr.msk.bf16.mxu0 %vm5086_vm0, %v5085_v0  ;;  %4321 = vmatprep.mubr.msk.bf16.mxu1 %vm5086_vm0, %v5085_v0 }
 0x1a2   : > { %4288 = vmatpush3.bf16.msra.mxu0 %v4608_v9  ;;  %4308 = vmatpush3.bf16.msra.mxu1 %v4609_v10 }
 0x1a3   : > { %4289 = vmatprep.subr.bf16.mxu0 %v5085_v0  ;;  %4309 = vmatprep.subr.bf16.mxu1 %v5085_v0 }
 0x1a6   : > { %4290 = vmatpush3.bf16.msra.mxu0 %v4610_v11  ;;  %4310 = vmatpush3.bf16.msra.mxu1 %v4611_v12 }
 0x1a7   : > { %4291 = vmatprep.subr.bf16.mxu0 %v5085_v0  ;;  %4311 = vmatprep.subr.bf16.mxu1 %v5085_v0 }
 0x1aa   : > { %4292 = vmatpush3.bf16.msra.mxu0 %v4612_v13  ;;  %4312 = vmatpush3.bf16.msra.mxu1 %v4613_v14 }
 0x1ab   : > { %4293 = vmatprep.subr.bf16.mxu0 %v5085_v0  ;;  %4313 = vmatprep.subr.bf16.mxu1 %v5085_v0 }
 0x1ae   : > { %4294 = vmatpush3.bf16.msra.mxu0 %v4614_v15  ;;  %4314 = vmatpush3.bf16.msra.mxu1 %v4615_v16 }
 0x1af   : > { %4295 = vmatprep.subr.bf16.mxu0 %v5085_v0  ;;  %4315 = vmatprep.subr.bf16.mxu1 %v5085_v0 }
 0x1b2   : > { %4296 = vmatpush3.bf16.msra.mxu0 %v4616_v17  ;;  %4316 = vmatpush3.bf16.msra.mxu1 %v4617_v18 }
 0x1b3   : > { %4297 = vmatprep.subr.bf16.mxu0 %v5085_v0  ;;  %4317 = vmatprep.subr.bf16.mxu1 %v5085_v0 }
 0x1b6   : > { %4298 = vmatpush3.bf16.msra.mxu0 %v4618_v19  ;;  %4318 = vmatpush3.bf16.msra.mxu1 %v4619_v20 }
 0x1b7   : > { %4299 = vmatprep.subr.bf16.mxu0 %v5085_v0  ;;  %4319 = vmatprep.subr.bf16.mxu1 %v5085_v0 }
 0x1ba   : > { %4300 = vmatpush3.bf16.msra.mxu0 %v4620_v21  ;;  %4320 = vmatpush3.bf16.msra.mxu1 %v4621_v22 }
 0x1bb   : > { %4325 = vmatprep.subr.bf16.mxu0 %v5085_v0  ;;  %4345 = vmatprep.subr.bf16.mxu1 %v5085_v0 }
 0x1bd   : > { %4302 = vmatmul.mubr.bf16.vlgmr.msra.gmra.mxu0 %v5470_v39  ;;  %4322 = vmatmul.mubr.bf16.vlgmr.msra.gmra.mxu1 %v5470_v39 }
 0x1be   : > { %4326 = vmatpush3.bf16.msra.mxu0 %v4622_v23  ;;  %4346 = vmatpush3.bf16.msra.mxu1 %v4623_v24 }
 0x1bf   : > { %4327 = vmatprep.subr.bf16.mxu0 %v5085_v0  ;;  %4347 = vmatprep.subr.bf16.mxu1 %v5085_v0 }
 0x1c0   : > { %4341 = vmatprep.mubr.msk.bf16.mxu0 %vm5086_vm0, %v5085_v0  ;;  %4361 = vmatprep.mubr.msk.bf16.mxu1 %vm5086_vm0, %v5085_v0 }
 0x1c2   : > { %4328 = vmatpush3.bf16.msra.mxu0 %v4624_v25  ;;  %4348 = vmatpush3.bf16.msra.mxu1 %v4625_v26 }
 0x1c3   : > { %4329 = vmatprep.subr.bf16.mxu0 %v5085_v0  ;;  %4349 = vmatprep.subr.bf16.mxu1 %v5085_v0 }
 0x1c6   : > { %4330 = vmatpush3.bf16.msra.mxu0 %v4626_v27  ;;  %4350 = vmatpush3.bf16.msra.mxu1 %v4627_v28 }
 0x1c7   : > { %4331 = vmatprep.subr.bf16.mxu0 %v5085_v0  ;;  %4351 = vmatprep.subr.bf16.mxu1 %v5085_v0 }
 0x1ca   : > { %4332 = vmatpush3.bf16.msra.mxu0 %v4628_v29  ;;  %4352 = vmatpush3.bf16.msra.mxu1 %v4629_v30 }
 0x1cb   : > { %4333 = vmatprep.subr.bf16.mxu0 %v5085_v0  ;;  %4353 = vmatprep.subr.bf16.mxu1 %v5085_v0 }
 0x1ce   : > { %4334 = vmatpush3.bf16.msra.mxu0 %v4630_v31  ;;  %4354 = vmatpush3.bf16.msra.mxu1 %v4631_v32 }
 0x1cf   : > { %4335 = vmatprep.subr.bf16.mxu0 %v5085_v0  ;;  %4355 = vmatprep.subr.bf16.mxu1 %v5085_v0 }
 0x1d2   : > { %4336 = vmatpush3.bf16.msra.mxu0 %v4632_v33  ;;  %4356 = vmatpush3.bf16.msra.mxu1 %v4633_v34 }
 0x1d3   : > { %4337 = vmatprep.subr.bf16.mxu0 %v5085_v0  ;;  %4357 = vmatprep.subr.bf16.mxu1 %v5085_v0 }
 0x1d6   : > { %4338 = vmatpush3.bf16.msra.mxu0 %v4634_v35  ;;  %4358 = vmatpush3.bf16.msra.mxu1 %v4635_v36 }
 0x1d7   : > { %4339 = vmatprep.subr.bf16.mxu0 %v5085_v0  ;;  %4359 = vmatprep.subr.bf16.mxu1 %v5085_v0 }
 0x1da   : > { %4340 = vmatpush3.bf16.msra.mxu0 %v4636_v37  ;;  %4360 = vmatpush3.bf16.msra.mxu1 %v4637_v38 }
 0x1db   : > { %4365 = vmatprep.subr.bf16.mxu0 %v5085_v0  ;;  %4385 = vmatprep.subr.bf16.mxu1 %v5085_v0 }
 0x1dd   : > { %4342 = vmatmul.mubr.bf16.vlgmr.msra.gmra.mxu0 %v5470_v39  ;;  %4362 = vmatmul.mubr.bf16.vlgmr.msra.gmra.mxu1 %v5470_v39 }
 0x1de   : > { %4366 = vmatpush3.bf16.msra.mxu0 %v4638_v40  ;;  %4386 = vmatpush3.bf16.msra.mxu1 %v4639_v41 }
 0x1df   : > { %4367 = vmatprep.subr.bf16.mxu0 %v5085_v0  ;;  %4387 = vmatprep.subr.bf16.mxu1 %v5085_v0 }
 0x1e0   : > { %4381 = vmatprep.mubr.msk.bf16.mxu0 %vm5086_vm0, %v5085_v0  ;;  %4401 = vmatprep.mubr.msk.bf16.mxu1 %vm5086_vm0, %v5085_v0 }
 0x1e2   : > { %4368 = vmatpush3.bf16.msra.mxu0 %v4640_v42  ;;  %4388 = vmatpush3.bf16.msra.mxu1 %v4641_v43 }
 0x1e3   : > { %4369 = vmatprep.subr.bf16.mxu0 %v5085_v0  ;;  %4389 = vmatprep.subr.bf16.mxu1 %v5085_v0 }
 0x1e6   : > { %4370 = vmatpush3.bf16.msra.mxu0 %v4642_v44  ;;  %4390 = vmatpush3.bf16.msra.mxu1 %v4643_v45 }
 0x1e7   : > { %4371 = vmatprep.subr.bf16.mxu0 %v5085_v0  ;;  %4391 = vmatprep.subr.bf16.mxu1 %v5085_v0 }
 0x1ea   : > { %4372 = vmatpush3.bf16.msra.mxu0 %v4644_v46  ;;  %4392 = vmatpush3.bf16.msra.mxu1 %v4645_v47 }
 0x1eb   : > { %4373 = vmatprep.subr.bf16.mxu0 %v5085_v0  ;;  %4393 = vmatprep.subr.bf16.mxu1 %v5085_v0 }
 0x1ee   : > { %4374 = vmatpush3.bf16.msra.mxu0 %v4646_v48  ;;  %4394 = vmatpush3.bf16.msra.mxu1 %v4647_v49 }
 0x1ef   : > { %4375 = vmatprep.subr.bf16.mxu0 %v5085_v0  ;;  %4395 = vmatprep.subr.bf16.mxu1 %v5085_v0 }
 0x1f2   : > { %4376 = vmatpush3.bf16.msra.mxu0 %v4648_v50  ;;  %4396 = vmatpush3.bf16.msra.mxu1 %v4649_v51 }
 0x1f3   : > { %4377 = vmatprep.subr.bf16.mxu0 %v5085_v0  ;;  %4397 = vmatprep.subr.bf16.mxu1 %v5085_v0 }
 0x1f6   : > { %4378 = vmatpush3.bf16.msra.mxu0 %v4650_v52  ;;  %4398 = vmatpush3.bf16.msra.mxu1 %v4651_v53 }
 0x1f7   : > { %4379 = vmatprep.subr.bf16.mxu0 %v5085_v0  ;;  %4399 = vmatprep.subr.bf16.mxu1 %v5085_v0 }
 0x1fa   : > { %4380 = vmatpush3.bf16.msra.mxu0 %v4652_v54  ;;  %4400 = vmatpush3.bf16.msra.mxu1 %v4653_v55 }
 0x1fb   : > { %4405 = vmatprep.subr.bf16.mxu0 %v5085_v0  ;;  %4411 = vmatprep.subr.bf16.mxu1 %v5085_v0 }
 0x1fd   : > { %4382 = vmatmul.mubr.bf16.vlgmr.msra.gmra.mxu0 %v5470_v39  ;;  %4402 = vmatmul.mubr.bf16.vlgmr.msra.gmra.mxu1 %v5470_v39 }
 0x1fe   : > { %4407 = vmatprep.mubr.msk.bf16.mxu0 %vm5086_vm0, %v5085_v0  ;;  %4413 = vmatprep.mubr.msk.bf16.mxu1 %vm5086_vm0, %v5085_v0 }
 0x21d   : > { %v745_v56 = vpop.f32.mrf.mxu0  ;;  %v834_v57 = vpop.f32.mrf.mxu1 }
 0x21f   : > { %v4183_v58 = vpop.f32.mrf.mxu0  ;;  %v4203_v59 = vpop.f32.mrf.mxu1 }
 0x221   : > { %v748_v60 = vpop.f32.mrf.mxu0  ;;  %v837_v61 = vpop.f32.mrf.mxu1 }
 0x222   : > { %v1859_v62 = vpack.c.bf16 %v748_v60, %v745_v56  ;;  %v1860_v63 = vpack.c.bf16 %v837_v61, %v834_v57 }
 0x223   : > { %v4184_v1 = vpop.f32.mrf.mxu0  ;;  %v4204_v2 = vpop.f32.mrf.mxu1 }
 0x23d   : > { %v923_v3 = vpop.f32.mrf.mxu0  ;;  %v1012_v4 = vpop.f32.mrf.mxu1 }
 0x23f   : > { %v4223_v5 = vpop.f32.mrf.mxu0  ;;  %v4243_v39 = vpop.f32.mrf.mxu1 }
 0x241   : > { %v926_v6 = vpop.f32.mrf.mxu0  ;;  %v1015_v7 = vpop.f32.mrf.mxu1 }
 0x242   : > { %v1861_v8 = vpack.c.bf16 %v926_v6, %v923_v3  ;;  %v1862_v9 = vpack.c.bf16 %v1015_v7, %v1012_v4 }
 0x243   : > { %v4224_v10 = vpop.f32.mrf.mxu0  ;;  %v4244_v11 = vpop.f32.mrf.mxu1 }
 0x25d   : > { %v1165_v12 = vpop.f32.mrf.mxu0  ;;  %v1254_v13 = vpop.f32.mrf.mxu1 }
 0x25f   : > { %v4263_v14 = vpop.f32.mrf.mxu0  ;;  %v4283_v15 = vpop.f32.mrf.mxu1 }
 0x261   : > { %v1168_v16 = vpop.f32.mrf.mxu0  ;;  %v1257_v17 = vpop.f32.mrf.mxu1 }
 0x262   : > { %v1863_v18 = vpack.c.bf16 %v1168_v16, %v1165_v12  ;;  %v1864_v19 = vpack.c.bf16 %v1257_v17, %v1254_v13 }
 0x263   : > { %v4264_v20 = vpop.f32.mrf.mxu0  ;;  %v4284_v21 = vpop.f32.mrf.mxu1 }
 0x264   : > { %v1872_v22 = vsel %vm1867_vm1, %v1863_v18, 0  ;;  %v1919_v23 = vsel %vm1867_vm1, %v1864_v19, 0 }
 0x265   : > { %4406 = vmatpush3.bf16.xpose.msra.mxu0 %v1872_v22  ;;  %4412 = vmatpush3.bf16.xpose.msra.mxu1 %v1919_v23 }
 0x266   : > { %4417 = vmatprep.subr.bf16.mxu0 %v5085_v0  ;;  %4423 = vmatprep.subr.bf16.mxu1 %v5085_v0 }
 0x26c   : > { %4408 = vmatmul.mubr.msk.bf16.vlgmr.msra.gmra.mxu0 %vm1867_vm1, %v1859_v62  ;;  %4414 = vmatmul.mubr.msk.bf16.vlgmr.msra.gmra.mxu1 %vm1867_vm1, %v1860_v63 }
 0x26d   : > { %4419 = vmatprep.mubr.msk.bf16.mxu0 %vm5086_vm0, %v5085_v0  ;;  %4425 = vmatprep.mubr.msk.bf16.mxu1 %vm5086_vm0, %v5085_v0 }
 0x27d   : > { %v1343_v24 = vpop.f32.mrf.mxu0  ;;  %v1432_v25 = vpop.f32.mrf.mxu1 }
 0x27f   : > { %v4303_v26 = vpop.f32.mrf.mxu0  ;;  %v4323_v27 = vpop.f32.mrf.mxu1 }
 0x281   : > { %v1346_v28 = vpop.f32.mrf.mxu0  ;;  %v1435_v29 = vpop.f32.mrf.mxu1 }
 0x282   : > { %v1865_v30 = vpack.c.bf16 %v1346_v28, %v1343_v24  ;;  %v1866_v31 = vpack.c.bf16 %v1435_v29, %v1432_v25 }
 0x283   : > { %v4304_v32 = vpop.f32.mrf.mxu0  ;;  %v4324_v33 = vpop.f32.mrf.mxu1 }
 0x284   : > { %v1966_v34 = vsel %vm1867_vm1, %v1865_v30, 0  ;;  %v2013_v35 = vsel %vm1867_vm1, %v1866_v31, 0 }
 0x285   : > { %4418 = vmatpush3.bf16.xpose.msra.mxu0 %v1966_v34  ;;  %4424 = vmatpush3.bf16.xpose.msra.mxu1 %v2013_v35 }
 0x286   : > { %4429 = vmatprep.subr.bf16.mxu0 %v5085_v0  ;;  %4435 = vmatprep.subr.bf16.mxu1 %v5085_v0 }
 0x28c   : > { %4420 = vmatmul.mubr.msk.bf16.vlgmr.msra.gmra.mxu0 %vm1867_vm1, %v1861_v8  ;;  %4426 = vmatmul.mubr.msk.bf16.vlgmr.msra.gmra.mxu1 %vm1867_vm1, %v1862_v9 }
 0x28d   : > { %4431 = vmatprep.mubr.msk.bf16.mxu0 %vm5086_vm0, %v5085_v0  ;;  %4437 = vmatprep.mubr.msk.bf16.mxu1 %vm5086_vm0, %v5085_v0 }
 0x29d   : > { %v1585_v36 = vpop.f32.mrf.mxu0  ;;  %v1674_v37 = vpop.f32.mrf.mxu1 }
 0x29f   : > { %v4343_v38 = vpop.f32.mrf.mxu0  ;;  %v4363_v40 = vpop.f32.mrf.mxu1 }
 0x2a1   : > { %v1588_v41 = vpop.f32.mrf.mxu0  ;;  %v1677_v42 = vpop.f32.mrf.mxu1 }
 0x2a2   : > { %v2149_v43 = vpack.c.bf16 %v1588_v41, %v1585_v36  ;;  %v2150_v44 = vpack.c.bf16 %v1677_v42, %v1674_v37 }
 0x2a3   : > { %v4344_v45 = vpop.f32.mrf.mxu0  ;;  %v4364_v46 = vpop.f32.mrf.mxu1 }
 0x2a4   : > { %4430 = vmatpush3.bf16.msra.mxu0 %v2149_v43  ;;  %4436 = vmatpush3.bf16.msra.mxu1 %v2150_v44 }
 0x2a5   : > { %4441 = vmatprep.subr.bf16.mxu0 %v5085_v0  ;;  %4447 = vmatprep.subr.bf16.mxu1 %v5085_v0 }
 0x2bd   : > { %v5844_v47 = vpop.f32.mrf.mxu0  ;;  %v5846_v48 = vpop.f32.mrf.mxu1 }
 0x2bf   : > { %v4383_v49 = vpop.f32.mrf.mxu0  ;;  %v4403_v50 = vpop.f32.mrf.mxu1 }
 0x2c1   : > { %v5848_v51 = vpop.f32.mrf.mxu0  ;;  %v5850_v52 = vpop.f32.mrf.mxu1 }
 0x2c2   : > { %v2151_v53 = vpack.c.bf16 %v5848_v51, %v5844_v47  ;;  %v2152_v54 = vpack.c.bf16 %v5850_v52, %v5846_v48 }
 0x2c3   : > { %v4384_v55 = vpop.f32.mrf.mxu0  ;;  %v4404_v56 = vpop.f32.mrf.mxu1 }
 0x32c   : > { %v1908_v57 = vpop.f32.mrf.mxu0  ;;  %v1955_v58 = vpop.f32.mrf.mxu1 }
 0x32d   : > { %v2063_v59 = vsel %vm2056_vm2, %v1955_v58, -inf  ;;  %v2057_v60 = vsel %vm2056_vm2, %v1908_v57, -inf }
 0x32e   : > { %2064 = vmax.xlane.f32.xlu0 %v2063_v59  ;;  %v4415_v61 = vpop.f32.mrf.mxu1  ;;  %2058 = vmax.xlane.f32.xlu1 %v2057_v60  ;;  %v4409_v62 = vpop.f32.mrf.mxu0 }
 0x330   : > { %v1911_v63 = vpop.f32.mrf.mxu0  ;;  %v1958_v1 = vpop.f32.mrf.mxu1 }
 0x331   : > { %v2060_v2 = vsel %vm2056_vm2, %v1911_v63, -inf  ;;  %v2066_v5 = vsel %vm2056_vm2, %v1958_v1, -inf }
 0x332   : > { %v4416_v3 = vpop.f32.mrf.mxu1  ;;  %2061 = vmax.xlane.f32.xlu1 %v2060_v2  ;;  %v4410_v4 = vpop.f32.mrf.mxu0 }
 0x336   : > { %2067 = vmax.xlane.f32.xlu1 %v2066_v5 }
 0x34c   : > { %v2002_v39 = vpop.f32.mrf.mxu0  ;;  %v2049_v6 = vpop.f32.mrf.mxu1 }
 0x34d   : > { %v2069_v7 = vsel %vm2056_vm2, %v2002_v39, -inf  ;;  %v2075_v12 = vsel %vm2056_vm2, %v2049_v6, -inf }
 0x34e   : > { %v4427_v8 = vpop.f32.mrf.mxu1  ;;  %2070 = vmax.xlane.f32.xlu0 %v2069_v7  ;;  %v4421_v9 = vpop.f32.mrf.mxu0 }
 0x350   : > { %v2005_v10 = vpop.f32.mrf.mxu0  ;;  %v2052_v11 = vpop.f32.mrf.mxu1 }
 0x351   : > { %v2072_v13 = vsel %vm2056_vm2, %v2005_v10, -inf  ;;  %v2078_v16 = vsel %vm2056_vm2, %v2052_v11, -inf }
 0x352   : > { %v4428_v14 = vpop.f32.mrf.mxu1  ;;  %2076 = vmax.xlane.f32.xlu0 %v2075_v12  ;;  %2073 = vmax.xlane.f32.xlu1 %v2072_v13  ;;  %v4422_v15 = vpop.f32.mrf.mxu0 }
 0x356   : > { %2079 = vmax.xlane.f32.xlu1 %v2078_v16 }
 0x3b7   : > { %v2065_v17 = vpop.xlane.xlu0 %2064  ;;  %v2059_v18 = vpop.xlane.xlu1 %2058 }
 0x3b8   : > { %v2083_v19 = vsub.f32 %v1955_v58, %v2065_v17  ;;  %v2081_v20 = vsub.f32 %v1908_v57, %v2059_v18 }
 0x3ba   : > { %v2089_v21 = vmul.f32 1.442695, %v2081_v20  ;;  %v2093_v22 = vmul.f32 1.442695, %v2083_v19 }
 0x3bb   : > { %v2062_v23 = vpop.xlane.xlu1 %2061 }
 0x3bc   : > { %v2082_v24 = vsub.f32 %v1911_v63, %v2062_v23  ;;  %4794 = vpow2.f32 %v2089_v21  ;;  %v4655_v23 = vld [vmem:[%s6356_s12] sm:$0xff]  }
 0x3bd   : > { %4796 = vpow2.f32 %v2093_v22  ;;  %v4654_v22 = vld [vmem:[%s6356_s12 + $0x8] sm:$0xff]  }
 0x3be   : > { %v2091_v25 = vmul.f32 1.442695, %v2082_v24  ;;  %v4656_v24 = vld [vmem:[%s6356_s12 + $0x18] sm:$0xff]  }
 0x3bf   : > { %v2068_v26 = vpop.xlane.xlu1 %2067 }
 0x3c0   : > { %4798 = vpow2.f32 %v2091_v25  ;;  %v2084_v27 = vsub.f32 %v1958_v1, %v2068_v26  ;;  %v4657_v25 = vld [vmem:[%s6356_s12 + $0x10] sm:$0xff]  }
 0x3c2   : > { %v2095_v28 = vmul.f32 1.442695, %v2084_v27 }
 0x3c4   : > { %4800 = vpow2.f32 %v2095_v28 }
 0x3c9   : > { %v4795_v29 = vpop.eup %4794 }
 0x3ca   : > { %v2105_v30 = vsel %vm2056_vm2, %v4795_v29, 0.0  ;;  %v4797_v31 = vpop.eup %4796 }
 0x3cb   : > { %2106 = vadd.xlane.f32.xlu0 %v2105_v30  ;;  %v2111_v34 = vsel %vm2056_vm2, %v4797_v31, 0.0  ;;  %v4658_v30 = vld [vmem:[%s6356_s12 + $0x28] sm:$0xff]  }
 0x3cd   : > { %v4799_v32 = vpop.eup %4798 }
 0x3ce   : > { %v2108_v33 = vsel %vm2056_vm2, %v4799_v32, 0.0 }
 0x3cf   : > { %2109 = vadd.xlane.f32.xlu1 %v2108_v33  ;;  %2112 = vadd.xlane.f32.xlu0 %v2111_v34 }
 0x3d1   : > { %v4801_v35 = vpop.eup %4800 }
 0x3d2   : > { %v2114_v36 = vsel %vm2056_vm2, %v4801_v35, 0.0 }
 0x3d3   : > { %2115 = vadd.xlane.f32.xlu1 %v2114_v36  ;;  %v4660_v36 = vld [vmem:[%s6356_s12 + $0x38] sm:$0xff]  }
 0x3d7   : > { %v2071_v37 = vpop.xlane.xlu0 %2070 }
 0x3d8   : > { %v2085_v38 = vsub.f32 %v2002_v39, %v2071_v37 }
 0x3da   : > { %v2097_v40 = vmul.f32 1.442695, %v2085_v38 }
 0x3db   : > { %v2077_v41 = vpop.xlane.xlu0 %2076  ;;  %v2074_v42 = vpop.xlane.xlu1 %2073 }
 0x3dc   : > { %4802 = vpow2.f32 %v2097_v40  ;;  %v2087_v43 = vsub.f32 %v2049_v6, %v2077_v41  ;;  %v2086_v44 = vsub.f32 %v2005_v10, %v2074_v42  ;;  %v4661_v40 = vld [vmem:[%s6356_s12 + $0x30] sm:$0xff]  }
 0x3de   : > { %v2101_v45 = vmul.f32 1.442695, %v2087_v43  ;;  %v2099_v46 = vmul.f32 1.442695, %v2086_v44 }
 0x3df   : > { %v2080_v49 = vpop.xlane.xlu1 %2079 }
 0x3e0   : > { %4804 = vpow2.f32 %v2101_v45  ;;  %v2088_v50 = vsub.f32 %v2052_v11, %v2080_v49 }
 0x3e1   : > { %4806 = vpow2.f32 %v2099_v46 }
 0x3e2   : > { %v2103_v55 = vmul.f32 1.442695, %v2088_v50 }
 0x3e4   : > { %4808 = vpow2.f32 %v2103_v55 }
 0x3e9   : > { %v4803_v56 = vpop.eup %4802 }
 0x3ea   : > { %v2117_v57 = vsel %vm2056_vm2, %v4803_v56, 0.0 }
 0x3eb   : > { %2118 = vadd.xlane.f32.xlu0 %v2117_v57  ;;  %v4662_v57 = vld [vmem:[%s6357_s20 + $0xe0] ss:$16 sps:$4 sm:$0xff]  }
 0x3ed   : > { %v4805_v58 = vpop.eup %4804 }
 0x3ee   : > { %v4807_v59 = vpop.eup %4806  ;;  %v2123_v60 = vsel %vm2056_vm2, %v4805_v58, 0.0 }
 0x3ef   : > { %2124 = vadd.xlane.f32.xlu0 %v2123_v60  ;;  %v2120_v61 = vsel %vm2056_vm2, %v4807_v59, 0.0  ;;  %v4670_v60 = vld [vmem:[%s6357_s20 + $0xc4] ss:$16 sps:$4 sm:$0xff]  }
 0x3f0   : > { %2121 = vadd.xlane.f32.xlu1 %v2120_v61  ;;  %v4673_v61 = vld [vmem:[%s6357_s20 + $0xcc] ss:$16 sps:$4 sm:$0xff]  }
 0x3f1   : > { %v4809_v62 = vpop.eup %4808 }
 0x3f2   : > { %v2126_v63 = vsel %vm2056_vm2, %v4809_v62, 0.0 }
 0x3f4   : > { %2127 = vadd.xlane.f32.xlu1 %v2126_v63  ;;  %v4671_v63 = vld [vmem:[%s6357_s20 + $0xc8] ss:$16 sps:$4 sm:$0xff]  }
 0x454   : > { %v2107_v1 = vpop.xlane.xlu0 %2106 }
 0x455   : > { %4810 = vrcp.f32 %v2107_v1 }
 0x458   : > { %v2110_v2 = vpop.xlane.xlu1 %2109  ;;  %v2113_v3 = vpop.xlane.xlu0 %2112 }
 0x459   : > { %4812 = vrcp.f32 %v2110_v2 }
 0x45a   : > { %4814 = vrcp.f32 %v2113_v3 }
 0x45c   : > { %v2116_v4 = vpop.xlane.xlu1 %2115 }
 0x45d   : > { %4816 = vrcp.f32 %v2116_v4 }
 0x462   : > { %v4811_v5 = vpop.eup %4810 }
 0x463   : > { %v2137_v6 = vmul.f32 %v4811_v5, %v4795_v29 }
 0x466   : > { %v4813_v39 = vpop.eup %4812 }
 0x467   : > { %v2138_v7 = vmul.f32 %v4813_v39, %v4799_v32  ;;  %v4815_v8 = vpop.eup %4814 }
 0x468   : > { %v2139_v11 = vmul.f32 %v4815_v8, %v4797_v31 }
 0x469   : > { %v2145_v9 = vpack.c.bf16 %v2138_v7, %v2137_v6 }
 0x46a   : > { %v4817_v10 = vpop.eup %4816 }
 0x46b   : > { %4432 = vmatmul.mubr.msk.bf16.vlgmr.msra.gmra.mxu0 %vm2056_vm2, %v2145_v9  ;;  %v2140_v12 = vmul.f32 %v4817_v10, %v4801_v35  ;;  %v4659_v35 = vld [vmem:[%s6356_s12 + $0x20] sm:$0xff]  }
 0x46c   : > { %4442 = vmatpush3.bf16.msra.mxu0 %v2151_v53  ;;  %4443 = vmatprep.mubr.msk.bf16.mxu0 %vm5086_vm0, %v5085_v0 }
 0x46d   : > { %v2146_v13 = vpack.c.bf16 %v2140_v12, %v2139_v11  ;;  %4453 = vmatprep.subr.bf16.mxu0 %v5085_v0 }
 0x46f   : > { %4438 = vmatmul.mubr.msk.bf16.vlgmr.msra.gmra.mxu1 %vm2056_vm2, %v2146_v13 }
 0x470   : > { %4448 = vmatpush3.bf16.msra.mxu1 %v2152_v54  ;;  %4449 = vmatprep.mubr.msk.bf16.mxu1 %vm5086_vm0, %v5085_v0 }
 0x471   : > { %4461 = vmatprep.subr.bf16.mxu1 %v5085_v0 }
 0x474   : > { %v2119_v14 = vpop.xlane.xlu0 %2118 }
 0x475   : > { %4818 = vrcp.f32 %v2119_v14 }
 0x478   : > { %v2125_v47 = vpop.xlane.xlu0 %2124 }
 0x479   : > { %v2122_v51 = vpop.xlane.xlu1 %2121 }
 0x47a   : > { %4820 = vrcp.f32 %v2122_v51 }
 0x47b   : > { %4822 = vrcp.f32 %v2125_v47 }
 0x47d   : > { %v2128_v53 = vpop.xlane.xlu1 %2127 }
 0x47e   : > { %4824 = vrcp.f32 %v2128_v53 }
 0x482   : > { %v4819_v15 = vpop.eup %4818 }
 0x483   : > { %v2141_v17 = vmul.f32 %v4819_v15, %v4803_v56 }
 0x487   : > { %v4821_v16 = vpop.eup %4820 }
 0x488   : > { %v2142_v18 = vmul.f32 %v4821_v16, %v4807_v59  ;;  %v4823_v19 = vpop.eup %4822  ;;  %v4667_v59 = vld [vmem:[%s6357_s20 + $0xec] ss:$16 sps:$4 sm:$0xff]   ;;  %v4862_v16 = vld [vmem:[%s5360_s10] sm:$0xff] }
 0x489   : > { %v2143_v54 = vmul.f32 %v4823_v19, %v4805_v58  ;;  %v4665_v58 = vld [vmem:[%s6357_s20 + $0xe8] ss:$16 sps:$4 sm:$0xff]  }
 0x48a   : > { %v2147_v48 = vpack.c.bf16 %v2142_v18, %v2141_v17 }
 0x48b   : > { %v4825_v52 = vpop.eup %4824 }
 0x48c   : > { %4444 = vmatmul.mubr.msk.bf16.vlgmr.msra.gmra.mxu0 %vm2056_vm2, %v2147_v48  ;;  %v2144_v20 = vmul.f32 %v4825_v52, %v4809_v62  ;;  %v4668_v62 = vld [vmem:[%s6357_s20 + $0xc0] ss:$16 sps:$4 sm:$0xff]  }
 0x48d   : > { %4457 = vmatprep.mubr.msk.bf16.mxu0 %vm5086_vm0, %v5085_v0  ;;  %4454 = vmatpush3.bf16.msra.mxu0 %v4654_v22  ;;  %v4676_v22 = vld [vmem:[%s6357_s20 + $0xa4] ss:$16 sps:$4 sm:$0xff]  }
 0x48e   : > { %v2148_v21 = vpack.c.bf16 %v2144_v20, %v2143_v54  ;;  %4455 = vmatprep.subr.bf16.mxu0 %v5085_v0  ;;  %v4863_v54 = vld [vmem:[%s5360_s10 + $0x8] sm:$0xff] }
 0x490   : > { %4450 = vmatmul.mubr.msk.bf16.vlgmr.msra.gmra.mxu1 %vm2056_vm2, %v2148_v21 }
 0x491   : > { %4465 = vmatprep.mubr.msk.bf16.mxu1 %vm5086_vm0, %v5085_v0  ;;  %4456 = vmatpush3.bf16.msra.mxu0 %v4655_v23  ;;  %v4679_v23 = vld [vmem:[%s6357_s20 + $0xac] ss:$16 sps:$4 sm:$0xff]  }
 0x492   : > { %4462 = vmatpush3.bf16.msra.mxu1 %v4656_v24  ;;  %4469 = vmatprep.subr.bf16.mxu0 %v5085_v0  ;;  %v4674_v24 = vld [vmem:[%s6357_s20 + $0xa0] ss:$16 sps:$4 sm:$0xff]  }
 0x493   : > { %4463 = vmatprep.subr.bf16.mxu1 %v5085_v0 }
 0x496   : > { %4464 = vmatpush3.bf16.msra.mxu1 %v4657_v25  ;;  %v4677_v25 = vld [vmem:[%s6357_s20 + $0xa8] ss:$16 sps:$4 sm:$0xff]  }
 0x497   : > { %4477 = vmatprep.subr.bf16.mxu1 %v5085_v0 }
 0x52b   : > { %v2190_v26 = vpop.f32.mrf.mxu0 }
 0x52d   : > { %v4433_v27 = vpop.f32.mrf.mxu0 }
 0x52e   : > { %v4685_v27 = vld [vmem:[%s6357_s20 + $0x8c] ss:$16 sps:$4 sm:$0xff]  }
 0x52f   : > { %v2193_v28 = vpop.f32.mrf.mxu0  ;;  %v2234_v29 = vpop.f32.mrf.mxu1 }
 0x530   : > { %v2329_v31 = vpack.c.bf16 %v2193_v28, %v2190_v26  ;;  %v4682_v26 = vld [vmem:[%s6357_s20 + $0x84] ss:$16 sps:$4 sm:$0xff]   ;;  %v4680_v28 = vld [vmem:[%s6357_s20 + $0x80] ss:$16 sps:$4 sm:$0xff]  }
 0x531   : > { %v4434_v32 = vpop.f32.mrf.mxu0  ;;  %v4439_v33 = vpop.f32.mrf.mxu1 }
 0x532   : > { %4458 = vmatmul.mubr.msk.bf16.vlgmr.msra.gmra.mxu0 %vm1867_vm1, %v2329_v31  ;;  %v4688_v31 = vld [vmem:[%s6357_s20 + $0x64] ss:$16 sps:$4 sm:$0xff]   ;;  %v4689_v32 = vld [vmem:[%s6357_s20 + $0x68] ss:$16 sps:$4 sm:$0xff]   ;;  %v4691_v33 = vld [vmem:[%s6357_s20 + $0x6c] ss:$16 sps:$4 sm:$0xff]  }
 0x533   : > { %v2237_v34 = vpop.f32.mrf.mxu1  ;;  %4470 = vmatpush3.bf16.msra.mxu0 %v4658_v30  ;;  %4473 = vmatprep.mubr.msk.bf16.mxu0 %vm5086_vm0, %v5085_v0  ;;  %v4686_v30 = vld [vmem:[%s6357_s20 + $0x60] ss:$16 sps:$4 sm:$0xff]  }
 0x534   : > { %v2330_v37 = vpack.c.bf16 %v2237_v34, %v2234_v29  ;;  %4471 = vmatprep.subr.bf16.mxu0 %v5085_v0  ;;  %v4683_v29 = vld [vmem:[%s6357_s20 + $0x88] ss:$16 sps:$4 sm:$0xff]   ;;  %v4694_v34 = vld [vmem:[%s6357_s20 + $0x44] ss:$16 sps:$4 sm:$0xff]  }
 0x535   : > { %v4440_v38 = vpop.f32.mrf.mxu1 }
 0x536   : > { %4466 = vmatmul.mubr.msk.bf16.vlgmr.msra.gmra.mxu1 %vm1867_vm1, %v2330_v37  ;;  %v4695_v37 = vld [vmem:[%s6357_s20 + $0x48] ss:$16 sps:$4 sm:$0xff]   ;;  %v4700_v38 = vld [vmem:[%s6357_s20 + $0x24] ss:$16 sps:$4 sm:$0xff]  }
 0x537   : > { %4472 = vmatpush3.bf16.msra.mxu0 %v4659_v35  ;;  %4478 = vmatpush3.bf16.msra.mxu1 %v4660_v36  ;;  %v4697_v35 = vld [vmem:[%s6357_s20 + $0x4c] ss:$16 sps:$4 sm:$0xff]   ;;  %v4692_v36 = vld [vmem:[%s6357_s20 + $0x40] ss:$16 sps:$4 sm:$0xff]  }
 0x538   : > { %4479 = vmatprep.subr.bf16.mxu1 %v5085_v0  ;;  %4481 = vmatprep.mubr.msk.bf16.mxu1 %vm5086_vm0, %v5085_v0  ;;  %v4664_v0 = vld [vmem:[%s6357_s20 + $0xe4] ss:$16 sps:$4 sm:$0xff]  }
 0x539   : > { %2806 = vmatprep.subr.bf16.mxu0 %v4664_v0 }
 0x53b   : > { %4480 = vmatpush3.bf16.msra.mxu1 %v4661_v40  ;;  %v4703_v40 = vld [vmem:[%s6357_s20 + $0x2c] ss:$16 sps:$4 sm:$0xff]  }
 0x53c   : > { %2849 = vmatprep.subr.bf16.mxu1 %v4667_v59 }
 0x54c   : > { %v2278_v41 = vpop.f32.mrf.mxu0 }
 0x54e   : > { %v4445_v42 = vpop.f32.mrf.mxu0 }
 0x54f   : > { %v4698_v42 = vld [vmem:[%s6357_s20 + $0x20] ss:$16 sps:$4 sm:$0xff]  }
 0x550   : > { %v2281_v43 = vpop.f32.mrf.mxu0  ;;  %v2322_v44 = vpop.f32.mrf.mxu1 }
 0x551   : > { %v2331_v45 = vpack.c.bf16 %v2281_v43, %v2278_v41  ;;  %v5087_v41 = vmov 0   ;;  %v4701_v43 = vld [vmem:[%s6357_s20 + $0x28] ss:$16 sps:$4 sm:$0xff]  }
 0x552   : > { %v4446_v46 = vpop.f32.mrf.mxu0  ;;  %v4451_v49 = vpop.f32.mrf.mxu1 }
 0x553   : > { %4474 = vmatmul.mubr.msk.bf16.vlgmr.msra.gmra.mxu0 %vm1867_vm1, %v2331_v45  ;;  %v4709_v45 = vld [vmem:[%s6357_s20 + $0xc] ss:$16 sps:$4 sm:$0xff]   ;;  %v4704_v46 = vld [vmem:[%s6357_s20] ss:$16 sps:$4 sm:$0xff]   ;;  %v4707_v49 = vld [vmem:[%s6357_s20 + $0x8] ss:$16 sps:$4 sm:$0xff]  }
 0x554   : > { %v2325_v50 = vpop.f32.mrf.mxu1  ;;  %2807 = vmatpush1.bf16.msra.mxu0 %v4662_v57  ;;  %2838 = vmatprep.mubr.bf16.mxu0 %v5087_v41 }
 0x555   : > { %v2332_v55 = vpack.c.bf16 %v2325_v50, %v2322_v44  ;;  %2808 = vmatprep.subr.bf16.mxu0 %v4670_v60  ;;  %v4706_v44 = vld [vmem:[%s6357_s20 + $0x4] ss:$16 sps:$4 sm:$0xff]  }
 0x556   : > { %v4452_v56 = vpop.f32.mrf.mxu1  ;;  %v4712_v50 = vld [vmem:[%s6358_s13 + $0xe4] ss:$16 sps:$4 sm:$0xff]  }
 0x557   : > { %4482 = vmatmul.mubr.msk.bf16.vlgmr.msra.gmra.mxu1 %vm1867_vm1, %v2332_v55  ;;  %v4715_v55 = vld [vmem:[%s6358_s13 + $0xec] ss:$16 sps:$4 sm:$0xff]  }
 0x558   : > { %2850 = vmatpush1.bf16.msra.mxu1 %v4665_v58  ;;  %2809 = vmatpush1.bf16.msra.mxu0 %v4668_v62 }
 0x559   : > { %2851 = vmatprep.subr.bf16.mxu1 %v4673_v61  ;;  %2810 = vmatprep.subr.bf16.mxu0 %v4676_v22  ;;  %v3872_v61 = vld [vmem:[%s497_s3] ss:$0 sm:$0xff]  ;;  %v4742_v22 = vld [vmem:[%s6358_s13 + $0x44] ss:$16 sps:$4 sm:$0xff]   ;;  %s5004_s3 = scalar_lea.vmem %s6251_s27, 256 }
 0x55a   : > { %2881 = vmatprep.mubr.bf16.mxu1 %v5087_v41  ;;  %p5005_p13 = scmp.ne.s32.totalorder %s6251_s27, %s5004_s3 }
 0x55c   : > { %2852 = vmatpush1.bf16.msra.mxu1 %v4671_v63  ;;  %2811 = vmatpush1.bf16.msra.mxu0 %v4674_v24  ;;  %v4740_v24 = vld [vmem:[%s6358_s13 + $0x40] ss:$16 sps:$4 sm:$0xff]   ;;  %p5006_p9 = pnand %p5005_p13, %p6363_p2 }
 0x55d   : > { %2853 = vmatprep.subr.bf16.mxu1 %v4679_v23  ;;  %2812 = vmatprep.subr.bf16.mxu0 %v4682_v26  ;;  %v4745_v23 = vld [vmem:[%s6358_s13 + $0x4c] ss:$16 sps:$4 sm:$0xff]   ;;  %v4748_v26 = vld [vmem:[%s6358_s13 + $0x24] ss:$16 sps:$4 sm:$0xff]  }
 0x55e   : > { %p5007_p3 = pneg %p5006_p9 }
 0x560   : > { %2854 = vmatpush1.bf16.msra.mxu1 %v4677_v25  ;;  %2813 = vmatpush1.bf16.msra.mxu0 %v4680_v28  ;;  %v4743_v25 = vld [vmem:[%s6358_s13 + $0x48] ss:$16 sps:$4 sm:$0xff]   ;;  %v4746_v28 = vld [vmem:[%s6358_s13 + $0x20] ss:$16 sps:$4 sm:$0xff]  }
 0x561   : > { %2855 = vmatprep.subr.bf16.mxu1 %v4685_v27  ;;  %2814 = vmatprep.subr.bf16.mxu0 %v4688_v31  ;;  %v4751_v27 = vld [vmem:[%s6358_s13 + $0x2c] ss:$16 sps:$4 sm:$0xff]  }
 0x562   : > { %v4757_v31 = vld [vmem:[%s6358_s13 + $0xc] ss:$16 sps:$4 sm:$0xff]  }
 0x564   : > { %2856 = vmatpush1.bf16.msra.mxu1 %v4683_v29  ;;  %2815 = vmatpush1.bf16.msra.mxu0 %v4686_v30  ;;  %v4749_v29 = vld [vmem:[%s6358_s13 + $0x28] ss:$16 sps:$4 sm:$0xff]   ;;  %v4754_v30 = vld [vmem:[%s6358_s13 + $0x4] ss:$16 sps:$4 sm:$0xff]  }
 0x565   : > { %2857 = vmatprep.subr.bf16.mxu1 %v4691_v33  ;;  %2816 = vmatprep.subr.bf16.mxu0 %v4694_v34  ;;  %v4755_v33 = vld [vmem:[%s6358_s13 + $0x8] ss:$16 sps:$4 sm:$0xff]  }
 0x566   : > { %v4758_v34 = vld [vmem:[%s6359_s23 + $0x78] sm:$0xff]  }
 0x568   : > { %2858 = vmatpush1.bf16.msra.mxu1 %v4689_v32  ;;  %2817 = vmatpush1.bf16.msra.mxu0 %v4692_v36  ;;  %v4752_v32 = vld [vmem:[%s6358_s13] ss:$16 sps:$4 sm:$0xff]   ;;  %v4760_v36 = vld [vmem:[%s6360_s16 + $0x38] sm:$0xff]  }
 0x569   : > { %2859 = vmatprep.subr.bf16.mxu1 %v4697_v35  ;;  %2818 = vmatprep.subr.bf16.mxu0 %v4700_v38  ;;  %v4759_v35 = vld [vmem:[%s6360_s16 + $0xf8] sm:$0xff]   ;;  %v4762_v38 = vld [vmem:[%s6360_s16 + $0x70] sm:$0xff]  }
 0x56c   : > { %2860 = vmatpush1.bf16.msra.mxu1 %v4695_v37  ;;  %2819 = vmatpush1.bf16.msra.mxu0 %v4698_v42  ;;  %v4761_v37 = vld [vmem:[%s6360_s16 + $0xb8] sm:$0xff]   ;;  %v4765_v42 = vld [vmem:[%s6360_s16 + $0xb0] sm:$0xff]  }
 0x56d   : > { %2861 = vmatprep.subr.bf16.mxu1 %v4703_v40  ;;  %2820 = vmatprep.subr.bf16.mxu0 %v4706_v44  ;;  %v4763_v40 = vld [vmem:[%s6360_s16 + $0xf0] sm:$0xff]   ;;  %v4767_v44 = vld [vmem:[%s6360_s16 + $0xe8] sm:$0xff]  }
 0x570   : > { %2862 = vmatpush1.bf16.msra.mxu1 %v4701_v43  ;;  %2821 = vmatpush1.bf16.msra.mxu0 %v4704_v46  ;;  %v4766_v43 = vld [vmem:[%s6360_s16 + $0x68] sm:$0xff]  }
 0x571   : > { %2863 = vmatprep.subr.bf16.mxu1 %v4709_v45  ;;  %3084 = vmatprep.subr.bf16.mxu0 %v4712_v50  ;;  %v4768_v45 = vld [vmem:[%s6360_s16 + $0x28] sm:$0xff]   ;;  %v4771_v50 = vld [vmem:[%s6360_s16 + $0xe0] sm:$0xff]  }
 0x572   : > { %v4769_v46 = vld [vmem:[%s6360_s16 + $0xa8] sm:$0xff]  }
 0x574   : > { %2864 = vmatpush1.bf16.msra.mxu1 %v4707_v49  ;;  %v4770_v49 = vld [vmem:[%s6360_s16 + $0x60] sm:$0xff]  }
 0x575   : > { %3127 = vmatprep.subr.bf16.mxu1 %v4715_v55  ;;  %v4772_v55 = vld [vmem:[%s6360_s16 + $0x20] sm:$0xff]  }
 0x5f2   : > { %v2398_v1 = vpop.f32.mrf.mxu0 }
 0x5f4   : > { %v4459_v2 = vpop.f32.mrf.mxu0 }
 0x5f6   : > { %v2401_v3 = vpop.f32.mrf.mxu0  ;;  %v2454_v4 = vpop.f32.mrf.mxu1 }
 0x5f7   : > { %v2573_v9 = vadd.f32 %v2454_v4, %v2398_v1  ;;  %v3873_v4 = vld [vmem:[%s505_s1] ss:$0 sm:$0xff]  ;;  %s3984_s1 = sshll.u32 %s5177_s25, 8  ;;  %s5088_s25 = smov [#allocation11]  }
 0x5f8   : > { %v4460_v5 = vpop.f32.mrf.mxu0  ;;  %v4467_v39 = vpop.f32.mrf.mxu1  ;;  %s6256_s29 = scalar_lea.hbm %s6362_s8, %s3984_s1  ;;  %s5008_s23 = sshll.u32 %s5088_s25, 4  ;;  %s5009_s23 = int_to_ptr.vmem [resolvable:$false] %s5008_s23 }
 0x5f9   : > { %s5010_s19 = scalar_lea.vmem %s5009_s23, 512  ;;  %p5011_p6 = scmp.lt.s32.totalorder %s6251_s27, %s5009_s23 }
 0x5fa   : > { %v2457_v6 = vpop.f32.mrf.mxu1  ;;  %p5012_p11 = scmp.lt.s32.totalorder %s5010_s19, %s5004_s3 }
 0x5fb   : > { %v2576_v14 = vadd.f32 %v2457_v6, %v2401_v3 }
 0x5fc   : > { %v4468_v7 = vpop.f32.mrf.mxu1  ;;  %p5013_p4 = por %p5012_p11, %p5011_p6 }
 0x5fd   : > { %v4710_v7 = vld [vmem:[%s6358_s13 + $0xe0] ss:$16 sps:$4 sm:$0xff]  }
 0x5fe   : > { %p5014_p12 = pnand %p5013_p4, %p5007_p3 }
 0x613   : > { %v2510_v8 = vpop.f32.mrf.mxu0 }
 0x614   : > { %v2574_v11 = vadd.f32 %v2573_v9, %v2510_v8  ;;  %v4713_v8 = vld [vmem:[%s6358_s13 + $0xe8] ss:$16 sps:$4 sm:$0xff]  }
 0x615   : > { %v4475_v10 = vpop.f32.mrf.mxu0 }
 0x616   : > { %v4718_v10 = vld [vmem:[%s6358_s13 + $0xc4] ss:$16 sps:$4 sm:$0xff]  }
 0x617   : > { %v2513_v12 = vpop.f32.mrf.mxu0  ;;  %v2566_v13 = vpop.f32.mrf.mxu1 }
 0x618   : > { %v2575_v47 = vadd.f32 %v2574_v11, %v2566_v13  ;;  %v2577_v15 = vadd.f32 %v2576_v14, %v2513_v12  ;;  %v4721_v11 = vld [vmem:[%s6358_s13 + $0xcc] ss:$16 sps:$4 sm:$0xff]   ;;  %v4716_v12 = vld [vmem:[%s6358_s13 + $0xc0] ss:$16 sps:$4 sm:$0xff]   ;;  %v4719_v13 = vld [vmem:[%s6358_s13 + $0xc8] ss:$16 sps:$4 sm:$0xff]  }
 0x619   : > { %v4476_v51 = vpop.f32.mrf.mxu0  ;;  %v4483_v53 = vpop.f32.mrf.mxu1  ;;  %v4724_v14 = vld [vmem:[%s6358_s13 + $0xa4] ss:$16 sps:$4 sm:$0xff]  }
 0x61a   : > { %v5955_v17 = vadd.f32 %v4862_v16, %v2575_v47  ;;  %v4727_v47 = vld [vmem:[%s6358_s13 + $0xac] ss:$16 sps:$4 sm:$0xff]   ;;  %v4722_v51 = vld [vmem:[%s6358_s13 + $0xa0] ss:$16 sps:$4 sm:$0xff]   ;;  %v4725_v53 = vld [vmem:[%s6358_s13 + $0xa8] ss:$16 sps:$4 sm:$0xff]  }
 0x61b   : > { %v2569_v18 = vpop.f32.mrf.mxu1  ;;  %v4733_v16 = vld [vmem:[%s6358_s13 + $0x8c] ss:$16 sps:$4 sm:$0xff]  }
 0x61c   : > { %v2578_v19 = vadd.f32 %v2577_v15, %v2569_v18  ;;  %v2583_v48 = vmul.f32 %v5955_v17, %v5955_v17  ;;  %v2597_v63 = vmul.f32 %v3872_v61, %v5955_v17  ;;  %v4730_v15 = vld [vmem:[%s6358_s13 + $0x84] ss:$16 sps:$4 sm:$0xff]   ;;  %v4728_v18 = vld [vmem:[%s6358_s13 + $0x80] ss:$16 sps:$4 sm:$0xff]  }
 0x61d   : > { %v4484_v52 = vpop.f32.mrf.mxu1 }
 0x61e   : > { %v5960_v20 = vadd.f32 %v4863_v54, %v2578_v19  ;;  %2585 = vadd.xlane.f32.xlu0 %v2583_v48  ;;  %v4731_v19 = vld [vmem:[%s6358_s13 + $0x88] ss:$16 sps:$4 sm:$0xff]   ;;  %v4736_v48 = vld [vmem:[%s6358_s13 + $0x64] ss:$16 sps:$4 sm:$0xff]   ;;  %v4739_v52 = vld [vmem:[%s6358_s13 + $0x6c] ss:$16 sps:$4 sm:$0xff]  }
 0x61f   : > { %v4734_v54 = vld [vmem:[%s6358_s13 + $0x60] ss:$16 sps:$4 sm:$0xff]  }
 0x620   : > { %v2584_v21 = vmul.f32 %v5960_v20, %v5960_v20  ;;  %v2598_v1 = vmul.f32 %v3872_v61, %v5960_v20  ;;  %v4779_v61 = vld [vmem:[%s6360_s16 + $0xd0] sm:$0xff]  }
 0x622   : > { %2587 = vadd.xlane.f32.xlu1 %v2584_v21  ;;  %v4737_v21 = vld [vmem:[%s6358_s13 + $0x68] ss:$16 sps:$4 sm:$0xff]  }
 0x6a7   : > { %v2586_v56 = vpop.xlane.xlu0 %2585 }
 0x6a8   : > { %v2589_v57 = vmul.f32 0.0078125, %v2586_v56  ;;  %v4773_v56 = vld [vmem:[%s6360_s16 + $0xa0] sm:$0xff]  }
 0x6aa   : > { %v2599_v0 = vadd.f32 1e-06, %v2589_v57  ;;  %v4774_v57 = vld [vmem:[%s6360_s16 + $0x58] sm:$0xff]  }
 0x6ab   : > { %v2588_v58 = vpop.xlane.xlu1 %2587 }
 0x6ac   : > { %4826 = vrsqrt.f32 %v2599_v0  ;;  %v2590_v59 = vmul.f32 0.0078125, %v2588_v58  ;;  %v4775_v0 = vld [vmem:[%s6360_s16 + $0xd8] sm:$0xff]  }
 0x6ad   : > { %v4776_v58 = vld [vmem:[%s6360_s16 + $0x18] sm:$0xff]  }
 0x6ae   : > { %v2600_v60 = vadd.f32 1e-06, %v2590_v59  ;;  %v4777_v59 = vld [vmem:[%s6360_s16 + $0x98] sm:$0xff]  }
 0x6b0   : > { %4828 = vrsqrt.f32 %v2600_v60  ;;  %v4778_v60 = vld [vmem:[%s6360_s16 + $0x50] sm:$0xff]  }
 0x6b9   : > { %v4827_v62 = vpop.eup %4826 }
 0x6ba   : > { %v2603_v2 = vmul.f32 %v4827_v62, %v2597_v63  ;;  %v4780_v62 = vld [vmem:[%s6360_s16 + $0x10] sm:$0xff]  }
 0x6bb   : > { %v4781_v63 = vld [vmem:[%s6360_s16 + $0x90] sm:$0xff]  }
 0x6bc   : > { %v2611_v39 = vadd.f32 %v3873_v4, %v2603_v2  ;;  %v4783_v2 = vld [vmem:[%s6360_s16 + $0xc8] sm:$0xff]  }
 0x6bd   : > { %v4829_v3 = vpop.eup %4828 }
 0x6be   : > { %v2604_v5 = vmul.f32 %v4829_v3, %v2598_v1  ;;  %v4782_v1 = vld [vmem:[%s6360_s16 + $0x48] sm:$0xff]  }
 0x6bf   : > { %v4784_v3 = vld [vmem:[%s6360_s16 + $0x8] sm:$0xff]  }
 0x6c0   : > { %v2612_v6 = vadd.f32 %v3873_v4, %v2604_v5  ;;  %v4785_v4 = vld [vmem:[%s6360_s16 + $0x88] sm:$0xff]   ;;  %v4786_v5 = vld [vmem:[%s6360_s16 + $0x40] sm:$0xff]  }
 0x6c2   : > { %v6053_v9 = vpack.c.bf16 %v2612_v6, %v2611_v39  ;;  %v4787_v39 = vld [vmem:[%s6360_s16 + $0xc0] sm:$0xff]  }
 0x6c3   : > { %v4788_v6 = vld [vmem:[%s6360_s16] sm:$0xff]  }
 0x6c4   : > { %2839 = vmatmul.mubr.bf16.vlgmr.msra.gmra.mxu0 %v6053_v9  ;;  %2882 = vmatmul.mubr.bf16.vlgmr.msra.gmra.mxu1 %v6053_v9 }
 0x6c5   : > { %3085 = vmatpush1.bf16.msra.mxu0 %v4710_v7  ;;  %3128 = vmatpush1.bf16.msra.mxu1 %v4713_v8  ;;  %v4789_v7 = vld [vmem:[%s6360_s16 + $0x80] sm:$0xff]  }
 0x6c6   : > { %3086 = vmatprep.subr.bf16.mxu0 %v4718_v10  ;;  %3129 = vmatprep.subr.bf16.mxu1 %v4721_v11 }
 0x6c7   : > { %3116 = vmatprep.mubr.bf16.mxu0 %v5087_v41  ;;  %3159 = vmatprep.mubr.bf16.mxu1 %v5087_v41  ;;  %v4764_v41 = vld [vmem:[%s6360_s16 + $0x30] sm:$0xff]  }
 0x6c9   : > { %3087 = vmatpush1.bf16.msra.mxu0 %v4716_v12  ;;  %3130 = vmatpush1.bf16.msra.mxu1 %v4719_v13 }
 0x6ca   : > { %3088 = vmatprep.subr.bf16.mxu0 %v4724_v14  ;;  %3131 = vmatprep.subr.bf16.mxu1 %v4727_v47 }
 0x6cd   : > { %3089 = vmatpush1.bf16.msra.mxu0 %v4722_v51  ;;  %3132 = vmatpush1.bf16.msra.mxu1 %v4725_v53 }
 0x6ce   : > { %3090 = vmatprep.subr.bf16.mxu0 %v4730_v15  ;;  %3133 = vmatprep.subr.bf16.mxu1 %v4733_v16 }
 0x6d1   : > { %3091 = vmatpush1.bf16.msra.mxu0 %v4728_v18  ;;  %3134 = vmatpush1.bf16.msra.mxu1 %v4731_v19 }
 0x6d2   : > { %3092 = vmatprep.subr.bf16.mxu0 %v4736_v48  ;;  %3135 = vmatprep.subr.bf16.mxu1 %v4739_v52 }
 0x6d5   : > { %3093 = vmatpush1.bf16.msra.mxu0 %v4734_v54  ;;  %3136 = vmatpush1.bf16.msra.mxu1 %v4737_v21 }
 0x6d6   : > { %3094 = vmatprep.subr.bf16.mxu0 %v4742_v22  ;;  %3137 = vmatprep.subr.bf16.mxu1 %v4745_v23 }
 0x6d9   : > { %3095 = vmatpush1.bf16.msra.mxu0 %v4740_v24  ;;  %3138 = vmatpush1.bf16.msra.mxu1 %v4743_v25 }
 0x6da   : > { %3096 = vmatprep.subr.bf16.mxu0 %v4748_v26  ;;  %3139 = vmatprep.subr.bf16.mxu1 %v4751_v27 }
 0x6dd   : > { %3097 = vmatpush1.bf16.msra.mxu0 %v4746_v28  ;;  %3140 = vmatpush1.bf16.msra.mxu1 %v4749_v29 }
 0x6de   : > { %3098 = vmatprep.subr.bf16.mxu0 %v4754_v30  ;;  %3141 = vmatprep.subr.bf16.mxu1 %v4757_v31 }
 0x6e1   : > { %3099 = vmatpush1.bf16.msra.mxu0 %v4752_v32  ;;  %3142 = vmatpush1.bf16.msra.mxu1 %v4755_v33 }
 0x6e2   : > { %4121 = vmatprep.subr.bf16.mxu0 %v4758_v34  ;;  %4143 = vmatprep.subr.bf16.mxu1 %v4759_v35 }
 0x6e4   : > { %3117 = vmatmul.mubr.bf16.vlgmr.msra.gmra.mxu0 %v6053_v9  ;;  %3160 = vmatmul.mubr.bf16.vlgmr.msra.gmra.mxu1 %v6053_v9 }
 0x6e5   : > { %4122 = vmatpush3.bf16.msra.mxu0 %v4760_v36  ;;  %4144 = vmatpush3.bf16.msra.mxu1 %v4761_v37 }
 0x6e6   : > { %4123 = vmatprep.subr.bf16.mxu0 %v4762_v38  ;;  %4145 = vmatprep.subr.bf16.mxu1 %v4763_v40 }
 0x6e9   : > { %4124 = vmatpush3.bf16.msra.mxu0 %v4764_v41  ;;  %4146 = vmatpush3.bf16.msra.mxu1 %v4765_v42 }
 0x6ea   : > { %4125 = vmatprep.subr.bf16.mxu0 %v4766_v43  ;;  %4147 = vmatprep.subr.bf16.mxu1 %v4767_v44 }
 0x6ed   : > { %4126 = vmatpush3.bf16.msra.mxu0 %v4768_v45  ;;  %4148 = vmatpush3.bf16.msra.mxu1 %v4769_v46 }
 0x6ee   : > { %4127 = vmatprep.subr.bf16.mxu0 %v4770_v49  ;;  %4149 = vmatprep.subr.bf16.mxu1 %v4771_v50 }
 0x6f1   : > { %4128 = vmatpush3.bf16.msra.mxu0 %v4772_v55  ;;  %4150 = vmatpush3.bf16.msra.mxu1 %v4773_v56 }
 0x6f2   : > { %4129 = vmatprep.subr.bf16.mxu0 %v4774_v57  ;;  %4151 = vmatprep.subr.bf16.mxu1 %v4775_v0 }
 0x6f5   : > { %4130 = vmatpush3.bf16.msra.mxu0 %v4776_v58  ;;  %4152 = vmatpush3.bf16.msra.mxu1 %v4777_v59 }
 0x6f6   : > { %4131 = vmatprep.subr.bf16.mxu0 %v4778_v60  ;;  %4153 = vmatprep.subr.bf16.mxu1 %v4779_v61 }
 0x6f9   : > { %4132 = vmatpush3.bf16.msra.mxu0 %v4780_v62  ;;  %4154 = vmatpush3.bf16.msra.mxu1 %v4781_v63 }
 0x6fa   : > { %4133 = vmatprep.subr.bf16.mxu0 %v4782_v1  ;;  %4155 = vmatprep.subr.bf16.mxu1 %v4783_v2 }
 0x6fd   : > { %4134 = vmatpush3.bf16.msra.mxu0 %v4784_v3  ;;  %4156 = vmatpush3.bf16.msra.mxu1 %v4785_v4 }
 0x6fe   : > { %4135 = vmatprep.subr.bf16.mxu0 %v4786_v5  ;;  %4157 = vmatprep.subr.bf16.mxu1 %v4787_v39 }
 0x701   : > { %4136 = vmatpush3.bf16.msra.mxu0 %v4788_v6  ;;  %4158 = vmatpush3.bf16.msra.mxu1 %v4789_v7 }
 0x784   : > { %v6239_v8 = vpop.f32.mrf.mxu0  ;;  %v6241_v9 = vpop.f32.mrf.mxu1 }
 0x785   : > { %v3938_v10 = vmul.f32 -1.442695, %v6239_v8  ;;  %v3940_v11 = vmul.f32 -1.442695, %v6241_v9 }
 0x786   : > { %v2842_v12 = vpop.f32.mrf.mxu0  ;;  %v2885_v13 = vpop.f32.mrf.mxu1 }
 0x787   : > { %4830 = vpow2.f32 %v3938_v10  ;;  %v3939_v14 = vmul.f32 -1.442695, %v2842_v12  ;;  %v3941_v47 = vmul.f32 -1.442695, %v2885_v13 }
 0x788   : > { %4832 = vpow2.f32 %v3940_v11  ;;  %v2844_v51 = vpop.f32.mrf.mxu0  ;;  %v2887_v53 = vpop.f32.mrf.mxu1 }
 0x789   : > { %4834 = vpow2.f32 %v3939_v14  ;;  %v3942_v15 = vmul.f32 -1.442695, %v2844_v51  ;;  %v3944_v16 = vmul.f32 -1.442695, %v2887_v53 }
 0x78a   : > { %4836 = vpow2.f32 %v3941_v47  ;;  %v2846_v18 = vpop.f32.mrf.mxu0  ;;  %v2889_v19 = vpop.f32.mrf.mxu1 }
 0x78b   : > { %4838 = vpow2.f32 %v3942_v15  ;;  %v3943_v48 = vmul.f32 -1.442695, %v2846_v18  ;;  %v3945_v52 = vmul.f32 -1.442695, %v2889_v19 }
 0x78c   : > { %4840 = vpow2.f32 %v3944_v16 }
 0x78d   : > { %4842 = vpow2.f32 %v3943_v48 }
 0x78e   : > { %4844 = vpow2.f32 %v3945_v52 }
 0x794   : > { %v4831_v54 = vpop.eup %4830 }
 0x795   : > { %v4833_v21 = vpop.eup %4832  ;;  %v3194_v22 = vadd.f32 1.0, %v4831_v54 }
 0x796   : > { %v4835_v23 = vpop.eup %4834  ;;  %v3196_v24 = vadd.f32 1.0, %v4833_v21 }
 0x797   : > { %v4837_v25 = vpop.eup %4836  ;;  %4846 = vrcp.f32 %v3194_v22  ;;  %v3195_v26 = vadd.f32 1.0, %v4835_v23 }
 0x798   : > { %v4839_v27 = vpop.eup %4838  ;;  %4848 = vrcp.f32 %v3196_v24  ;;  %v3197_v28 = vadd.f32 1.0, %v4837_v25 }
 0x799   : > { %v4841_v29 = vpop.eup %4840  ;;  %4850 = vrcp.f32 %v3195_v26  ;;  %v3198_v30 = vadd.f32 1.0, %v4839_v27 }
 0x79a   : > { %v4843_v31 = vpop.eup %4842  ;;  %4852 = vrcp.f32 %v3197_v28  ;;  %v3200_v32 = vadd.f32 1.0, %v4841_v29 }
 0x79b   : > { %v4845_v33 = vpop.eup %4844  ;;  %4854 = vrcp.f32 %v3198_v30  ;;  %v3199_v34 = vadd.f32 1.0, %v4843_v31 }
 0x79c   : > { %4856 = vrcp.f32 %v3200_v32  ;;  %v3201_v35 = vadd.f32 1.0, %v4845_v33 }
 0x79d   : > { %4858 = vrcp.f32 %v3199_v34 }
 0x79e   : > { %4860 = vrcp.f32 %v3201_v35 }
 0x7a4   : > { %v4847_v36 = vpop.eup %4846  ;;  %v3118_v37 = vpop.f32.mrf.mxu0 }
 0x7a5   : > { %v3161_v38 = vpop.f32.mrf.mxu1  ;;  %v4849_v40 = vpop.eup %4848  ;;  %v3218_v0 = vmul.f32 %v4847_v36, %v6239_v8 }
 0x7a6   : > { %v4851_v41 = vpop.eup %4850  ;;  %v3120_v42 = vpop.f32.mrf.mxu0  ;;  %v3220_v61 = vmul.f32 %v4849_v40, %v6241_v9 }
 0x7a7   : > { %v3163_v43 = vpop.f32.mrf.mxu1  ;;  %v4853_v44 = vpop.eup %4852  ;;  %v3219_v50 = vmul.f32 %v4851_v41, %v2842_v12  ;;  %v3226_v6 = vmul.f32 %v3218_v0, %v3118_v37 }
 0x7a8   : > { %v4855_v45 = vpop.eup %4854  ;;  %v3122_v46 = vpop.f32.mrf.mxu0  ;;  %v3221_v58 = vmul.f32 %v4853_v44, %v2885_v13  ;;  %v3228_v11 = vmul.f32 %v3220_v61, %v3161_v38 }
 0x7a9   : > { %v4857_v49 = vpop.eup %4856  ;;  %v3222_v55 = vmul.f32 %v4855_v45, %v2844_v51  ;;  %v3165_v56 = vpop.f32.mrf.mxu1  ;;  %v3227_v3 = vmul.f32 %v3219_v50, %v3120_v42 }
 0x7aa   : > { %v4859_v57 = vpop.eup %4858  ;;  %v3224_v59 = vmul.f32 %v4857_v49, %v2887_v53  ;;  %v3124_v2 = vpop.f32.mrf.mxu0  ;;  %v3229_v7 = vmul.f32 %v3221_v58, %v3163_v43 }
 0x7ab   : > { %v4861_v60 = vpop.eup %4860  ;;  %v3223_v62 = vmul.f32 %v4859_v57, %v2846_v18  ;;  %v3230_v1 = vmul.f32 %v3222_v55, %v3122_v46  ;;  %v3167_v39 = vpop.f32.mrf.mxu1 }
 0x7ac   : > { %v3225_v63 = vmul.f32 %v4861_v60, %v2889_v19  ;;  %v3232_v4 = vmul.f32 %v3224_v59, %v3165_v56 }
 0x7ad   : > { %v3231_v5 = vmul.f32 %v3223_v62, %v3124_v2  ;;  %v3234_v14 = vpack.c.bf16 %v3230_v1, %v3226_v6 }
 0x7ae   : > { %v3233_v10 = vmul.f32 %v3225_v63, %v3167_v39  ;;  %v3236_v13 = vpack.c.bf16 %v3232_v4, %v3228_v11 }
 0x7af   : > { %v3235_v12 = vpack.c.bf16 %v3231_v5, %v3227_v3 }
 0x7b0   : > { %v3237_v8 = vpack.c.bf16 %v3233_v10, %v3229_v7 }
 0x7b1   : > { %3526 = vmatprep.mubr.bf16.mxu0 %v3235_v12 }
 0x7b2   : > { %3567 = vmatprep.mubr.bf16.mxu1 %v3237_v8  ;;  %3527 = vmatmul.mubr.bf16.vlgmr.msra.gmra.mxu0 %v3234_v14 }
 0x7b3   : > { %3568 = vmatmul.mubr.bf16.vlgmr.msra.gmra.mxu1 %v3236_v13 }
 0x872   : > { %v4137_v9 = vpop.f32.mrf.mxu0 }
 0x873   : > { %v4159_v47 = vpop.f32.mrf.mxu1 }
 0x874   : > { %v4138_v51 = vpop.f32.mrf.mxu0 }
 0x875   : > { %v4139_v53 = vadd.f32 %v4138_v51, %v4137_v9  ;;  %v4160_v15 = vpop.f32.mrf.mxu1 }
 0x876   : > { %v4161_v16 = vadd.f32 %v4160_v15, %v4159_v47  ;;  %v4140_v18 = vpop.f32.mrf.mxu0 }
 0x877   : > { %v4162_v19 = vpop.f32.mrf.mxu1 }
 0x878   : > { %v3570_v48 = vadd.f32 %v4161_v16, %v4139_v53  ;;  %v4141_v52 = vpop.f32.mrf.mxu0 }
 0x879   : > { %v4142_v54 = vadd.f32 %v4141_v52, %v4140_v18  ;;  %v4163_v21 = vpop.f32.mrf.mxu1 }
 0x87a   : > { %v3576_v22 = vadd.f32 %v3570_v48, %v5955_v17  ;;  %v4164_v23 = vadd.f32 %v4163_v21, %v4162_v19 }
 0x87c   : > { %3578 = vst [vmem:[%s561_s21] sm:$0xff] %v3576_v22  ;;  %v3573_v24 = vadd.f32 %v4164_v23, %v4142_v54 }
 0x87e   : > { %v3577_v25 = vadd.f32 %v3573_v24, %v5960_v20 }
 0x880   : > { %3579 = vst [vmem:[%s561_s21 + $0x8] sm:$0xff] %v3577_v25 }
 0x881   : > { %5017 = shalt.err (!%p5014_p12)
}
 0x882   : > { %s5018_s9 = scalar_lea.hbm %s6256_s29, 256  ;;  %s5022_s0 = scalar_lea.hbm %s6362_s8, 512 }
 0x883   : > { %p5019_p5 = scmp.ne.s32.totalorder %s6256_s29, %s5018_s9  ;;  %p5023_p10 = scmp.lt.s32.totalorder %s6256_s29, %s6362_s8 }
 0x884   : > { %p5024_p0 = scmp.lt.s32.totalorder %s5022_s0, %s5018_s9 }
 0x885   : > { %p5020_p7 = pnand %p5019_p5, %p6363_p2 }
 0x886   : > { %p5025_p1 = por %p5024_p0, %p5023_p10 }
 0x887   : > { %p5021_p8 = pneg %p5020_p7 }
 0x889   : > { %p5026_p13 = pnand %p5025_p1, %p5021_p8 }
 0x88b   : > { %5029 = shalt.err (!%p5026_p13)
}
 0x88c   : > { %s5089_s24 = smov 128   ;;  %s5090_s21 = smov 8  }
 0x88d   : > { %4495 = dma.vmem_to_hbm [thread:$0]  (%p6363_p2), %s6251_s27, 256, %s6256_s29, %s3581_s18, %s5089_s24, %s5089_s24, %s5090_s21  }
 0x88e PF: > { %s6364_s1 = sld [smem:[#allocation16_spill]] }
 0x88f   : > { %s6365_s26 = sld [smem:[#allocation22_spill]] }
 0x890   : > { %s6366_s28 = sld [smem:[#allocation18_spill]] }
 0x894   : > { %s3609_s3 = sand.u32 1, %s6364_s1  }
 0x895   : > { %p6367_p9 = scmp.ne.s32.totalorder %s6365_s26, 0  ;;  %s3610_s25 = scalar_lea.sflag [#allocation4], %s3609_s3 }
 0x896   : > { %p6368_p3 = scmp.ge.s32.totalorder %s6366_s28, 2 }
 0x898   : > { %p4514_p6 = pnand %p6368_p3, %p6367_p9 }
 0x89a   : > { %p4515_p11 = pneg %p4514_p6 }
 0x89c   : > { %5059 = dma.done.wait (%p4515_p11), %s3610_s25, 256  }
 0x89d   : > { %5061 = vsyncadd (%p4515_p11), %s3610_s25, 4294967040  ;;  %s6369_s24 = sld [smem:[#allocation19_spill]]  ;;  %s6372_s21 = smov %s5068_s22 }
 0x89e   : > { %s6370_s23 = sld [smem:[#allocation17_spill]] }
 0x89f   : > { %s6371_s19 = sld [smem:[#allocation20_spill]] }
 0x8a3   : > { %p31_p4 = scmp.ge.s32.totalorder %s6369_s24, 4  }
 0x8a4   : > { %s6373_s22 = smov %s6370_s23 }
 0x8a5   : > { %s6374_s23 = smov %s6371_s19  ;;  %33 = sbr.rel (!%p31_p4) target bundleno = 18 (0x12), region = 161 }
 0x8aa   :  { %3615 = vsyncpa [#allocation3], 1 }
 0x8ab   :  { %3617 = vsyncpa [#allocation3 + $0x1], 1 }
 0x8ac   :  { %3618 = vsyncpa [#allocation6], 1 }
 0x8ad   :  { %3620 = vsyncpa [#allocation6 + $0x1], 1 }
 0x8ae   :  { %3621 = vsyncpa [#allocation9], 1 }
 0x8af   :  { %3623 = vsyncpa [#allocation9 + $0x1], 1 }
 0x8b0   :  { %3624 = vsyncpa [#allocation4], 1 }
 0x8b1   :  { %3626 = vsyncpa [#allocation4 + $0x1], 1 }

</bundles_post_ra>
